<compile_context>
chip_gen: v7x
topology: tpu7x:2x2x1
jax: 0.10.0
libtpu: 0.0.40
codegen_flags: <defaults>
</compile_context>

<pallas_src>
import numpy as np

import jax
import jax.numpy as jnp
from jax.experimental import pallas as pl
from jax.experimental.pallas import tpu as pltpu


# ----------------------------- fused Pallas kernel -----------------------------

def _make_fused_kernel(B, Cin, H, W, Cout, num_classes):
    Ho, Wo = H // 2, W // 2
    half = Wo * Cout          # lanes per pooled row (= 64 here)
    KH = 3

    def kernel(x_ref, wconv_ref, bconv_ref, wfc_ref, bfc_ref,
               out_ref, conv_ref, pool_ref):
        # -------- Conv2d(3x3, stride 1, pad 1); bias/ReLU deferred --------
        # conv_ref[b*H + h, (w%2)*half + (w//2)*Cout + co]
        #   = sum_{ci,kh,kw} weight[co,ci,kh,kw] * x[b,ci,h+kh-1,w+kw-1]
        conv_ref[...] = jnp.zeros_like(conv_ref)
        for b in range(B):
            for ci in range(Cin):
                for kh in range(KH):
                    dh = kh - 1                      # input-row offset
                    n = H - abs(dh)                  # rows that stay in range
                    src = (b * Cin + ci) * H + max(0, dh)
                    dst = b * H + max(0, -dh)
                    lhs = x_ref[src:src + n, :]                       # (n, W)
                    band = wconv_ref[(ci * KH + kh) * W:
                                     (ci * KH + kh + 1) * W, :]       # (W, W*Cout)
                    part = jnp.dot(lhs, band,
                                   preferred_element_type=jnp.float32)
                    conv_ref[dst:dst + n, :] = conv_ref[dst:dst + n, :] + part

        # -------- MaxPool2d(2) + conv bias + ReLU --------
        ev = conv_ref[pl.ds(0, B * Ho, stride=2), :]   # rows (b, 2*ho)
        od = conv_ref[pl.ds(1, B * Ho, stride=2), :]   # rows (b, 2*ho + 1)
        rp = jnp.maximum(ev, od)                       # max over h-pairs
        cp = jnp.maximum(rp[:, :half], rp[:, half:])   # max over w-pairs
        # bias is constant per pooling window and ReLU is monotone, so both
        # commute with the max and are applied after pooling.
        pool_ref[...] = jnp.maximum(cp + bconv_ref[...], 0.0)  # (B*Ho, Wo*Cout)

        # -------- Flatten (absorbed into wfc row order) + Linear --------
        acc = jnp.zeros((B, num_classes), jnp.float32)
        for ho in range(Ho):
            rows = pool_ref[pl.ds(ho, B, stride=Ho), :]           # (B, Wo*Cout)
            g = wfc_ref[ho * half:(ho + 1) * half, :]             # (Wo*Cout, nc)
            acc = acc + jnp.dot(rows, g, preferred_element_type=jnp.float32)
        out_ref[...] = acc + bfc_ref[...]

    return kernel


# --------------------------- build-time weight packing --------------------------

def _pack_branch_params(conv_w, conv_b, fc_w, fc_b, H, W):
    conv_w = np.asarray(conv_w, np.float32)   # (Cout, Cin, 3, 3)  PyTorch layout
    conv_b = np.asarray(conv_b, np.float32)   # (Cout,)
    fc_w = np.asarray(fc_w, np.float32)       # (nc, Cout*Ho*Wo)   PyTorch layout
    fc_b = np.asarray(fc_b, np.float32)       # (nc,)

    Cout, Cin, KH, KW = conv_w.shape
    nc = fc_w.shape[0]
    Ho, Wo = H // 2, W // 2
    assert KH == 3 and KW == 3
    assert H % 2 == 0 and W % 2 == 0
    assert fc_w.shape[1] == Cout * Ho * Wo

    # Conv output lane layout (pooling-friendly, lane-dense: W*Cout = 128 lanes).
    def col(w, co):
        return (w % 2) * (Wo * Cout) + (w // 2) * Cout + co

    # Band matrices: band_{ci,kh}[wi, col(w, co)] = weight[co, ci, kh, wi-w+1]
    # (zero where the kw tap falls off the edge -> implements width zero-padding).
    wconv = np.zeros((Cin * KH * W, W * Cout), np.float32)
    for ci in range(Cin):
        for kh in range(KH):
            r0 = (ci * KH + kh) * W
            for wi in range(W):
                for w in range(W):
                    kw = wi - w + 1
                    if 0 <= kw < KW:
                        wconv[r0 + wi, col(w, 0):col(w, 0) + Cout] = conv_w[:, ci, kh, kw]

    # Post-pool conv bias row, lane = wo*Cout + co.
    bconv = np.tile(conv_b, Wo).reshape(1, Wo * Cout)

    # FC weights permuted once so the pooled (b*Ho+ho, wo*Cout+co) layout
    # contracts exactly like PyTorch's flatten of the NCHW pooled tensor.
    wfc = (fc_w.reshape(nc, Cout, Ho, Wo)
               .transpose(2, 3, 1, 0)
               .reshape(Ho * Wo * Cout, nc))
    bfc = fc_b.reshape(1, nc)

    return tuple(jnp.asarray(a) for a in (wconv, bconv, wfc, bfc))


# ------------------------------- fused forward ---------------------------------

@jax.jit
def _fused_branch_forward(x, wconv, bconv, wfc, bfc):
    """Conv(3x3,pad=1)+bias+ReLU -> MaxPool(2) -> Flatten -> Linear in one kernel."""
    B, Cin, H, W = x.shape
    Cout = wconv.shape[1] // W
    num_classes = bfc.shape[1]
    Ho, Wo = H // 2, W // 2

    kernel = _make_fused_kernel(B, Cin, H, W, Cout, num_classes)
    x2d = x.reshape(B * Cin * H, W)        # pure reshape of the NCHW tensor

    return pl.pallas_call(
        kernel,
        out_shape=jax.ShapeDtypeStruct((B, num_classes), jnp.float32),
        grid=(1,),
        in_specs=[
            pl.BlockSpec((B * Cin * H, W), lambda i: (0, 0)),
            pl.BlockSpec((Cin * 3 * W, W * Cout), lambda i: (0, 0)),
            pl.BlockSpec((1, Wo * Cout), lambda i: (0, 0)),
            pl.BlockSpec((Ho * Wo * Cout, num_classes), lambda i: (0, 0)),
            pl.BlockSpec((1, num_classes), lambda i: (0, 0)),
        ],
        out_specs=pl.BlockSpec((B, num_classes), lambda i: (0, 0)),
        scratch_shapes=[
            pltpu.VMEM((B * H, W * Cout), jnp.float32),      # conv output
            pltpu.VMEM((B * Ho, Wo * Cout), jnp.float32),    # pooled output
        ],
        compiler_params=pltpu.CompilerParams(dimension_semantics=("arbitrary",)),
    )(x2d, wconv, bconv, wfc, bfc)


# -------------------------------- Branch module ---------------------------------

class Branch:
    """Sequential container matching the PyTorch Branch.forward loop."""

    def __init__(self, branches):
        self.branches = list(branches)

    def forward(self, x):
        for branch in self.branches:
            x = branch(x)
        return x

    __call__ = forward


def make_branch(params, H, W):
    """[Conv2d+ReLU, MaxPool2d(2), Flatten, Linear] fused into one Pallas call."""
    conv_w, conv_b, fc_w, fc_b = params
    packed = _pack_branch_params(conv_w, conv_b, fc_w, fc_b, H, W)

    def fused_layer(x):
        return _fused_branch_forward(x, *packed)

    # The five PyTorch sub-modules are fused into a single Pallas kernel, so the
    # sequential container holds one callable (same composition semantics).
    return Branch([fused_layer])


# ------------------------------ pure-JAX reference ------------------------------

def _reference_forward(x, conv_w, conv_b, fc_w, fc_b):
    y = jax.lax.conv_general_dilated(
        x, conv_w, window_strides=(1, 1), padding=((1, 1), (1, 1)),
        dimension_numbers=("NCHW", "OIHW", "NCHW"),
        precision=jax.lax.Precision.HIGHEST)
    y = jnp.maximum(y + conv_b[None, :, None, None], 0.0)
    y = jax.lax.reduce_window(y, -jnp.inf, jax.lax.max,
                              (1, 1, 2, 2), (1, 1, 2, 2), "VALID")
    y = y.reshape(y.shape[0], -1)
    return jnp.dot(y, fc_w.T, precision=jax.lax.Precision.HIGHEST) + fc_b


# ------------------------------------ main ---------------------------------------

if __name__ == "__main__":
    B, Cin, H, W = 2, 4, 16, 16
    Cout, num_classes = 8, 10

    key = jax.random.PRNGKey(0)
    k_x, k_cw, k_cb, k_fw, k_fb = jax.random.split(key, 5)

    x = jax.random.normal(k_x, (B, Cin, H, W), dtype=jnp.float32)

    # deterministic synthetic parameters (shapes follow the PyTorch layers)
    conv_w = 0.1 * jax.random.normal(k_cw, (Cout, Cin, 3, 3), dtype=jnp.float32)
    conv_b = 0.1 * jax.random.normal(k_cb, (Cout,), dtype=jnp.float32)
    fc_in = Cout * (H // 2) * (W // 2)                        # 8 * 8 * 8 = 512
    fc_w = 0.05 * jax.random.normal(k_fw, (num_classes, fc_in), dtype=jnp.float32)
    fc_b = 0.05 * jax.random.normal(k_fb, (num_classes,), dtype=jnp.float32)

    branch = make_branch((conv_w, conv_b, fc_w, fc_b), H, W)
    out = branch(x)
    out = jax.block_until_ready(out)

    assert out.shape == (B, num_classes), out.shape
    assert out.dtype == jnp.float32

    ref = _reference_forward(x, conv_w, conv_b, fc_w, fc_b)
    np.testing.assert_allclose(np.asarray(out), np.asarray(ref),
                               rtol=1e-2, atol=1e-2)

    print("KERNEL_OK")
</pallas_src>

<mosaic_0001>
module attributes {stable_mosaic.version = 11 : i64} {
  func.func @kernel(%arg0: i32, %arg1: memref<128x16xf32, #tpu.memory_space<vmem>>, %arg2: memref<192x128xf32, #tpu.memory_space<vmem>>, %arg3: memref<1x64xf32, #tpu.memory_space<vmem>>, %arg4: memref<512x10xf32, #tpu.memory_space<vmem>>, %arg5: memref<1x10xf32, #tpu.memory_space<vmem>>, %arg6: memref<2x10xf32, #tpu.memory_space<vmem>>, %arg7: memref<32x128xf32, #tpu.memory_space<vmem>>, %arg8: memref<16x64xf32, #tpu.memory_space<vmem>>) attributes {dimension_semantics = [#tpu.dimension_semantics<arbitrary>], iteration_bounds = array<i64: 1>, scalar_prefetch = 0 : i64, scratch_operands = 2 : i64, tpu.core_type = #tpu.core_type<tc>, window_params = [{pipeline_mode = #tpu.pipeline_mode<synchronous>, transform_indices = @transform_0, window_bounds = array<i64: 128, 16>}, {pipeline_mode = #tpu.pipeline_mode<synchronous>, transform_indices = @transform_1, window_bounds = array<i64: 192, 128>}, {pipeline_mode = #tpu.pipeline_mode<synchronous>, transform_indices = @transform_2, window_bounds = array<i64: 1, 64>}, {pipeline_mode = #tpu.pipeline_mode<synchronous>, transform_indices = @transform_3, window_bounds = array<i64: 512, 10>}, {pipeline_mode = #tpu.pipeline_mode<synchronous>, transform_indices = @transform_4, window_bounds = array<i64: 1, 10>}, {pipeline_mode = #tpu.pipeline_mode<synchronous>, transform_indices = @transform_5, window_bounds = array<i64: 2, 10>}]} {
    %cst = arith.constant 0.000000e+00 : f32
    %0 = vector.broadcast %cst : f32 to vector<32x128xf32>
    %c0 = arith.constant 0 : index
    %c0_0 = arith.constant 0 : index
    %1 = vector.load %arg7[%c0, %c0_0] : memref<32x128xf32, #tpu.memory_space<vmem>>, vector<32x128xf32>
    tpu.vector_store %arg7[%c0, %c0_0], %0 {strides = array<i32>} : memref<32x128xf32, #tpu.memory_space<vmem>>, vector<32x128xf32>,
    %c0_1 = arith.constant 0 : index
    %c0_2 = arith.constant 0 : index
    %2 = vector.load %arg1[%c0_1, %c0_2] : memref<128x16xf32, #tpu.memory_space<vmem>>, vector<15x16xf32>
    %c0_3 = arith.constant 0 : index
    %c0_4 = arith.constant 0 : index
    %3 = vector.load %arg2[%c0_3, %c0_4] : memref<192x128xf32, #tpu.memory_space<vmem>>, vector<16x128xf32>
    %cst_5 = arith.constant dense<0.000000e+00> : vector<15x128xf32>
    %4 = tpu.matmul %2, %3, %cst_5 {dimension_numbers = #tpu.dot_dimension_numbers<[1], [0], [0], [1], [0, 0, 1, 1], [], []>} : vector<15x16xf32>, vector<16x128xf32>, vector<15x128xf32> -> vector<15x128xf32>
    %c1 = arith.constant 1 : index
    %c0_6 = arith.constant 0 : index
    %5 = vector.load %arg7[%c1, %c0_6] : memref<32x128xf32, #tpu.memory_space<vmem>>, vector<15x128xf32>
    %6 = arith.addf %5, %4 : vector<15x128xf32>
    %c1_7 = arith.constant 1 : index
    %c0_8 = arith.constant 0 : index
    %7 = vector.load %arg7[%c1_7, %c0_8] : memref<32x128xf32, #tpu.memory_space<vmem>>, vector<15x128xf32>
    tpu.vector_store %arg7[%c1_7, %c0_8], %6 {strides = array<i32>} : memref<32x128xf32, #tpu.memory_space<vmem>>, vector<15x128xf32>,
    %c0_9 = arith.constant 0 : index
    %c0_10 = arith.constant 0 : index
    %8 = vector.load %arg1[%c0_9, %c0_10] : memref<128x16xf32, #tpu.memory_space<vmem>>, vector<16x16xf32>
    %c16 = arith.constant 16 : index
    %c0_11 = arith.constant 0 : index
    %9 = vector.load %arg2[%c16, %c0_11] : memref<192x128xf32, #tpu.memory_space<vmem>>, vector<16x128xf32>
    %cst_12 = arith.constant dense<0.000000e+00> : vector<16x128xf32>
    %10 = tpu.matmul %8, %9, %cst_12 {dimension_numbers = #tpu.dot_dimension_numbers<[1], [0], [0], [1], [0, 0, 1, 1], [], []>} : vector<16x16xf32>, vector<16x128xf32>, vector<16x128xf32> -> vector<16x128xf32>
    %c0_13 = arith.constant 0 : index
    %c0_14 = arith.constant 0 : index
    %11 = vector.load %arg7[%c0_13, %c0_14] : memref<32x128xf32, #tpu.memory_space<vmem>>, vector<16x128xf32>
    %12 = arith.addf %11, %10 : vector<16x128xf32>
    %c0_15 = arith.constant 0 : index
    %c0_16 = arith.constant 0 : index
    %13 = vector.load %arg7[%c0_15, %c0_16] : memref<32x128xf32, #tpu.memory_space<vmem>>, vector<16x128xf32>
    tpu.vector_store %arg7[%c0_15, %c0_16], %12 {strides = array<i32>} : memref<32x128xf32, #tpu.memory_space<vmem>>, vector<16x128xf32>,
    %c1_17 = arith.constant 1 : index
    %c0_18 = arith.constant 0 : index
    %14 = vector.load %arg1[%c1_17, %c0_18] : memref<128x16xf32, #tpu.memory_space<vmem>>, vector<15x16xf32>
    %c32 = arith.constant 32 : index
    %c0_19 = arith.constant 0 : index
    %15 = vector.load %arg2[%c32, %c0_19] : memref<192x128xf32, #tpu.memory_space<vmem>>, vector<16x128xf32>
    %cst_20 = arith.constant dense<0.000000e+00> : vector<15x128xf32>
    %16 = tpu.matmul %14, %15, %cst_20 {dimension_numbers = #tpu.dot_dimension_numbers<[1], [0], [0], [1], [0, 0, 1, 1], [], []>} : vector<15x16xf32>, vector<16x128xf32>, vector<15x128xf32> -> vector<15x128xf32>
    %c0_21 = arith.constant 0 : index
    %c0_22 = arith.constant 0 : index
    %17 = vector.load %arg7[%c0_21, %c0_22] : memref<32x128xf32, #tpu.memory_space<vmem>>, vector<15x128xf32>
    %18 = arith.addf %17, %16 : vector<15x128xf32>
    %c0_23 = arith.constant 0 : index
    %c0_24 = arith.constant 0 : index
    %19 = vector.load %arg7[%c0_23, %c0_24] : memref<32x128xf32, #tpu.memory_space<vmem>>, vector<15x128xf32>
    tpu.vector_store %arg7[%c0_23, %c0_24], %18 {strides = array<i32>} : memref<32x128xf32, #tpu.memory_space<vmem>>, vector<15x128xf32>,
    %c16_25 = arith.constant 16 : index
    %c0_26 = arith.constant 0 : index
    %20 = vector.load %arg1[%c16_25, %c0_26] : memref<128x16xf32, #tpu.memory_space<vmem>>, vector<15x16xf32>
    %c48 = arith.constant 48 : index
    %c0_27 = arith.constant 0 : index
    %21 = vector.load %arg2[%c48, %c0_27] : memref<192x128xf32, #tpu.memory_space<vmem>>, vector<16x128xf32>
    %cst_28 = arith.constant dense<0.000000e+00> : vector<15x128xf32>
    %22 = tpu.matmul %20, %21, %cst_28 {dimension_numbers = #tpu.dot_dimension_numbers<[1], [0], [0], [1], [0, 0, 1, 1], [], []>} : vector<15x16xf32>, vector<16x128xf32>, vector<15x128xf32> -> vector<15x128xf32>
    %c1_29 = arith.constant 1 : index
    %c0_30 = arith.constant 0 : index
    %23 = vector.load %arg7[%c1_29, %c0_30] : memref<32x128xf32, #tpu.memory_space<vmem>>, vector<15x128xf32>
    %24 = arith.addf %23, %22 : vector<15x128xf32>
    %c1_31 = arith.constant 1 : index
    %c0_32 = arith.constant 0 : index
    %25 = vector.load %arg7[%c1_31, %c0_32] : memref<32x128xf32, #tpu.memory_space<vmem>>, vector<15x128xf32>
    tpu.vector_store %arg7[%c1_31, %c0_32], %24 {strides = array<i32>} : memref<32x128xf32, #tpu.memory_space<vmem>>, vector<15x128xf32>,
    %c16_33 = arith.constant 16 : index
    %c0_34 = arith.constant 0 : index
    %26 = vector.load %arg1[%c16_33, %c0_34] : memref<128x16xf32, #tpu.memory_space<vmem>>, vector<16x16xf32>
    %c64 = arith.constant 64 : index
    %c0_35 = arith.constant 0 : index
    %27 = vector.load %arg2[%c64, %c0_35] : memref<192x128xf32, #tpu.memory_space<vmem>>, vector<16x128xf32>
    %cst_36 = arith.constant dense<0.000000e+00> : vector<16x128xf32>
    %28 = tpu.matmul %26, %27, %cst_36 {dimension_numbers = #tpu.dot_dimension_numbers<[1], [0], [0], [1], [0, 0, 1, 1], [], []>} : vector<16x16xf32>, vector<16x128xf32>, vector<16x128xf32> -> vector<16x128xf32>
    %c0_37 = arith.constant 0 : index
    %c0_38 = arith.constant 0 : index
    %29 = vector.load %arg7[%c0_37, %c0_38] : memref<32x128xf32, #tpu.memory_space<vmem>>, vector<16x128xf32>
    %30 = arith.addf %29, %28 : vector<16x128xf32>
    %c0_39 = arith.constant 0 : index
    %c0_40 = arith.constant 0 : index
    %31 = vector.load %arg7[%c0_39, %c0_40] : memref<32x128xf32, #tpu.memory_space<vmem>>, vector<16x128xf32>
    tpu.vector_store %arg7[%c0_39, %c0_40], %30 {strides = array<i32>} : memref<32x128xf32, #tpu.memory_space<vmem>>, vector<16x128xf32>,
    %c17 = arith.constant 17 : index
    %c0_41 = arith.constant 0 : index
    %32 = vector.load %arg1[%c17, %c0_41] : memref<128x16xf32, #tpu.memory_space<vmem>>, vector<15x16xf32>
    %c80 = arith.constant 80 : index
    %c0_42 = arith.constant 0 : index
    %33 = vector.load %arg2[%c80, %c0_42] : memref<192x128xf32, #tpu.memory_space<vmem>>, vector<16x128xf32>
    %cst_43 = arith.constant dense<0.000000e+00> : vector<15x128xf32>
    %34 = tpu.matmul %32, %33, %cst_43 {dimension_numbers = #tpu.dot_dimension_numbers<[1], [0], [0], [1], [0, 0, 1, 1], [], []>} : vector<15x16xf32>, vector<16x128xf32>, vector<15x128xf32> -> vector<15x128xf32>
    %c0_44 = arith.constant 0 : index
    %c0_45 = arith.constant 0 : index
    %35 = vector.load %arg7[%c0_44, %c0_45] : memref<32x128xf32, #tpu.memory_space<vmem>>, vector<15x128xf32>
    %36 = arith.addf %35, %34 : vector<15x128xf32>
    %c0_46 = arith.constant 0 : index
    %c0_47 = arith.constant 0 : index
    %37 = vector.load %arg7[%c0_46, %c0_47] : memref<32x128xf32, #tpu.memory_space<vmem>>, vector<15x128xf32>
    tpu.vector_store %arg7[%c0_46, %c0_47], %36 {strides = array<i32>} : memref<32x128xf32, #tpu.memory_space<vmem>>, vector<15x128xf32>,
    %c32_48 = arith.constant 32 : index
    %c0_49 = arith.constant 0 : index
    %38 = vector.load %arg1[%c32_48, %c0_49] : memref<128x16xf32, #tpu.memory_space<vmem>>, vector<15x16xf32>
    %c96 = arith.constant 96 : index
    %c0_50 = arith.constant 0 : index
    %39 = vector.load %arg2[%c96, %c0_50] : memref<192x128xf32, #tpu.memory_space<vmem>>, vector<16x128xf32>
    %cst_51 = arith.constant dense<0.000000e+00> : vector<15x128xf32>
    %40 = tpu.matmul %38, %39, %cst_51 {dimension_numbers = #tpu.dot_dimension_numbers<[1], [0], [0], [1], [0, 0, 1, 1], [], []>} : vector<15x16xf32>, vector<16x128xf32>, vector<15x128xf32> -> vector<15x128xf32>
    %c1_52 = arith.constant 1 : index
    %c0_53 = arith.constant 0 : index
    %41 = vector.load %arg7[%c1_52, %c0_53] : memref<32x128xf32, #tpu.memory_space<vmem>>, vector<15x128xf32>
    %42 = arith.addf %41, %40 : vector<15x128xf32>
    %c1_54 = arith.constant 1 : index
    %c0_55 = arith.constant 0 : index
    %43 = vector.load %arg7[%c1_54, %c0_55] : memref<32x128xf32, #tpu.memory_space<vmem>>, vector<15x128xf32>
    tpu.vector_store %arg7[%c1_54, %c0_55], %42 {strides = array<i32>} : memref<32x128xf32, #tpu.memory_space<vmem>>, vector<15x128xf32>,
    %c32_56 = arith.constant 32 : index
    %c0_57 = arith.constant 0 : index
    %44 = vector.load %arg1[%c32_56, %c0_57] : memref<128x16xf32, #tpu.memory_space<vmem>>, vector<16x16xf32>
    %c112 = arith.constant 112 : index
    %c0_58 = arith.constant 0 : index
    %45 = vector.load %arg2[%c112, %c0_58] : memref<192x128xf32, #tpu.memory_space<vmem>>, vector<16x128xf32>
    %cst_59 = arith.constant dense<0.000000e+00> : vector<16x128xf32>
    %46 = tpu.matmul %44, %45, %cst_59 {dimension_numbers = #tpu.dot_dimension_numbers<[1], [0], [0], [1], [0, 0, 1, 1], [], []>} : vector<16x16xf32>, vector<16x128xf32>, vector<16x128xf32> -> vector<16x128xf32>
    %c0_60 = arith.constant 0 : index
    %c0_61 = arith.constant 0 : index
    %47 = vector.load %arg7[%c0_60, %c0_61] : memref<32x128xf32, #tpu.memory_space<vmem>>, vector<16x128xf32>
    %48 = arith.addf %47, %46 : vector<16x128xf32>
    %c0_62 = arith.constant 0 : index
    %c0_63 = arith.constant 0 : index
    %49 = vector.load %arg7[%c0_62, %c0_63] : memref<32x128xf32, #tpu.memory_space<vmem>>, vector<16x128xf32>
    tpu.vector_store %arg7[%c0_62, %c0_63], %48 {strides = array<i32>} : memref<32x128xf32, #tpu.memory_space<vmem>>, vector<16x128xf32>,
    %c33 = arith.constant 33 : index
    %c0_64 = arith.constant 0 : index
    %50 = vector.load %arg1[%c33, %c0_64] : memref<128x16xf32, #tpu.memory_space<vmem>>, vector<15x16xf32>
    %c128 = arith.constant 128 : index
    %c0_65 = arith.constant 0 : index
    %51 = vector.load %arg2[%c128, %c0_65] : memref<192x128xf32, #tpu.memory_space<vmem>>, vector<16x128xf32>
    %cst_66 = arith.constant dense<0.000000e+00> : vector<15x128xf32>
    %52 = tpu.matmul %50, %51, %cst_66 {dimension_numbers = #tpu.dot_dimension_numbers<[1], [0], [0], [1], [0, 0, 1, 1], [], []>} : vector<15x16xf32>, vector<16x128xf32>, vector<15x128xf32> -> vector<15x128xf32>
    %c0_67 = arith.constant 0 : index
    %c0_68 = arith.constant 0 : index
    %53 = vector.load %arg7[%c0_67, %c0_68] : memref<32x128xf32, #tpu.memory_space<vmem>>, vector<15x128xf32>
    %54 = arith.addf %53, %52 : vector<15x128xf32>
    %c0_69 = arith.constant 0 : index
    %c0_70 = arith.constant 0 : index
    %55 = vector.load %arg7[%c0_69, %c0_70] : memref<32x128xf32, #tpu.memory_space<vmem>>, vector<15x128xf32>
    tpu.vector_store %arg7[%c0_69, %c0_70], %54 {strides = array<i32>} : memref<32x128xf32, #tpu.memory_space<vmem>>, vector<15x128xf32>,
    %c48_71 = arith.constant 48 : index
    %c0_72 = arith.constant 0 : index
    %56 = vector.load %arg1[%c48_71, %c0_72] : memref<128x16xf32, #tpu.memory_space<vmem>>, vector<15x16xf32>
    %c144 = arith.constant 144 : index
    %c0_73 = arith.constant 0 : index
    %57 = vector.load %arg2[%c144, %c0_73] : memref<192x128xf32, #tpu.memory_space<vmem>>, vector<16x128xf32>
    %cst_74 = arith.constant dense<0.000000e+00> : vector<15x128xf32>
    %58 = tpu.matmul %56, %57, %cst_74 {dimension_numbers = #tpu.dot_dimension_numbers<[1], [0], [0], [1], [0, 0, 1, 1], [], []>} : vector<15x16xf32>, vector<16x128xf32>, vector<15x128xf32> -> vector<15x128xf32>
    %c1_75 = arith.constant 1 : index
    %c0_76 = arith.constant 0 : index
    %59 = vector.load %arg7[%c1_75, %c0_76] : memref<32x128xf32, #tpu.memory_space<vmem>>, vector<15x128xf32>
    %60 = arith.addf %59, %58 : vector<15x128xf32>
    %c1_77 = arith.constant 1 : index
    %c0_78 = arith.constant 0 : index
    %61 = vector.load %arg7[%c1_77, %c0_78] : memref<32x128xf32, #tpu.memory_space<vmem>>, vector<15x128xf32>
    tpu.vector_store %arg7[%c1_77, %c0_78], %60 {strides = array<i32>} : memref<32x128xf32, #tpu.memory_space<vmem>>, vector<15x128xf32>,
    %c48_79 = arith.constant 48 : index
    %c0_80 = arith.constant 0 : index
    %62 = vector.load %arg1[%c48_79, %c0_80] : memref<128x16xf32, #tpu.memory_space<vmem>>, vector<16x16xf32>
    %c160 = arith.constant 160 : index
    %c0_81 = arith.constant 0 : index
    %63 = vector.load %arg2[%c160, %c0_81] : memref<192x128xf32, #tpu.memory_space<vmem>>, vector<16x128xf32>
    %cst_82 = arith.constant dense<0.000000e+00> : vector<16x128xf32>
    %64 = tpu.matmul %62, %63, %cst_82 {dimension_numbers = #tpu.dot_dimension_numbers<[1], [0], [0], [1], [0, 0, 1, 1], [], []>} : vector<16x16xf32>, vector<16x128xf32>, vector<16x128xf32> -> vector<16x128xf32>
    %c0_83 = arith.constant 0 : index
    %c0_84 = arith.constant 0 : index
    %65 = vector.load %arg7[%c0_83, %c0_84] : memref<32x128xf32, #tpu.memory_space<vmem>>, vector<16x128xf32>
    %66 = arith.addf %65, %64 : vector<16x128xf32>
    %c0_85 = arith.constant 0 : index
    %c0_86 = arith.constant 0 : index
    %67 = vector.load %arg7[%c0_85, %c0_86] : memref<32x128xf32, #tpu.memory_space<vmem>>, vector<16x128xf32>
    tpu.vector_store %arg7[%c0_85, %c0_86], %66 {strides = array<i32>} : memref<32x128xf32, #tpu.memory_space<vmem>>, vector<16x128xf32>,
    %c49 = arith.constant 49 : index
    %c0_87 = arith.constant 0 : index
    %68 = vector.load %arg1[%c49, %c0_87] : memref<128x16xf32, #tpu.memory_space<vmem>>, vector<15x16xf32>
    %c176 = arith.constant 176 : index
    %c0_88 = arith.constant 0 : index
    %69 = vector.load %arg2[%c176, %c0_88] : memref<192x128xf32, #tpu.memory_space<vmem>>, vector<16x128xf32>
    %cst_89 = arith.constant dense<0.000000e+00> : vector<15x128xf32>
    %70 = tpu.matmul %68, %69, %cst_89 {dimension_numbers = #tpu.dot_dimension_numbers<[1], [0], [0], [1], [0, 0, 1, 1], [], []>} : vector<15x16xf32>, vector<16x128xf32>, vector<15x128xf32> -> vector<15x128xf32>
    %c0_90 = arith.constant 0 : index
    %c0_91 = arith.constant 0 : index
    %71 = vector.load %arg7[%c0_90, %c0_91] : memref<32x128xf32, #tpu.memory_space<vmem>>, vector<15x128xf32>
    %72 = arith.addf %71, %70 : vector<15x128xf32>
    %c0_92 = arith.constant 0 : index
    %c0_93 = arith.constant 0 : index
    %73 = vector.load %arg7[%c0_92, %c0_93] : memref<32x128xf32, #tpu.memory_space<vmem>>, vector<15x128xf32>
    tpu.vector_store %arg7[%c0_92, %c0_93], %72 {strides = array<i32>} : memref<32x128xf32, #tpu.memory_space<vmem>>, vector<15x128xf32>,
    %c64_94 = arith.constant 64 : index
    %c0_95 = arith.constant 0 : index
    %74 = vector.load %arg1[%c64_94, %c0_95] : memref<128x16xf32, #tpu.memory_space<vmem>>, vector<15x16xf32>
    %c0_96 = arith.constant 0 : index
    %c0_97 = arith.constant 0 : index
    %75 = vector.load %arg2[%c0_96, %c0_97] : memref<192x128xf32, #tpu.memory_space<vmem>>, vector<16x128xf32>
    %cst_98 = arith.constant dense<0.000000e+00> : vector<15x128xf32>
    %76 = tpu.matmul %74, %75, %cst_98 {dimension_numbers = #tpu.dot_dimension_numbers<[1], [0], [0], [1], [0, 0, 1, 1], [], []>} : vector<15x16xf32>, vector<16x128xf32>, vector<15x128xf32> -> vector<15x128xf32>
    %c17_99 = arith.constant 17 : index
    %c0_100 = arith.constant 0 : index
    %77 = vector.load %arg7[%c17_99, %c0_100] : memref<32x128xf32, #tpu.memory_space<vmem>>, vector<15x128xf32>
    %78 = arith.addf %77, %76 : vector<15x128xf32>
    %c17_101 = arith.constant 17 : index
    %c0_102 = arith.constant 0 : index
    %79 = vector.load %arg7[%c17_101, %c0_102] : memref<32x128xf32, #tpu.memory_space<vmem>>, vector<15x128xf32>
    tpu.vector_store %arg7[%c17_101, %c0_102], %78 {strides = array<i32>} : memref<32x128xf32, #tpu.memory_space<vmem>>, vector<15x128xf32>,
    %c64_103 = arith.constant 64 : index
    %c0_104 = arith.constant 0 : index
    %80 = vector.load %arg1[%c64_103, %c0_104] : memref<128x16xf32, #tpu.memory_space<vmem>>, vector<16x16xf32>
    %c16_105 = arith.constant 16 : index
    %c0_106 = arith.constant 0 : index
    %81 = vector.load %arg2[%c16_105, %c0_106] : memref<192x128xf32, #tpu.memory_space<vmem>>, vector<16x128xf32>
    %cst_107 = arith.constant dense<0.000000e+00> : vector<16x128xf32>
    %82 = tpu.matmul %80, %81, %cst_107 {dimension_numbers = #tpu.dot_dimension_numbers<[1], [0], [0], [1], [0, 0, 1, 1], [], []>} : vector<16x16xf32>, vector<16x128xf32>, vector<16x128xf32> -> vector<16x128xf32>
    %c16_108 = arith.constant 16 : index
    %c0_109 = arith.constant 0 : index
    %83 = vector.load %arg7[%c16_108, %c0_109] : memref<32x128xf32, #tpu.memory_space<vmem>>, vector<16x128xf32>
    %84 = arith.addf %83, %82 : vector<16x128xf32>
    %c16_110 = arith.constant 16 : index
    %c0_111 = arith.constant 0 : index
    %85 = vector.load %arg7[%c16_110, %c0_111] : memref<32x128xf32, #tpu.memory_space<vmem>>, vector<16x128xf32>
    tpu.vector_store %arg7[%c16_110, %c0_111], %84 {strides = array<i32>} : memref<32x128xf32, #tpu.memory_space<vmem>>, vector<16x128xf32>,
    %c65 = arith.constant 65 : index
    %c0_112 = arith.constant 0 : index
    %86 = vector.load %arg1[%c65, %c0_112] : memref<128x16xf32, #tpu.memory_space<vmem>>, vector<15x16xf32>
    %c32_113 = arith.constant 32 : index
    %c0_114 = arith.constant 0 : index
    %87 = vector.load %arg2[%c32_113, %c0_114] : memref<192x128xf32, #tpu.memory_space<vmem>>, vector<16x128xf32>
    %cst_115 = arith.constant dense<0.000000e+00> : vector<15x128xf32>
    %88 = tpu.matmul %86, %87, %cst_115 {dimension_numbers = #tpu.dot_dimension_numbers<[1], [0], [0], [1], [0, 0, 1, 1], [], []>} : vector<15x16xf32>, vector<16x128xf32>, vector<15x128xf32> -> vector<15x128xf32>
    %c16_116 = arith.constant 16 : index
    %c0_117 = arith.constant 0 : index
    %89 = vector.load %arg7[%c16_116, %c0_117] : memref<32x128xf32, #tpu.memory_space<vmem>>, vector<15x128xf32>
    %90 = arith.addf %89, %88 : vector<15x128xf32>
    %c16_118 = arith.constant 16 : index
    %c0_119 = arith.constant 0 : index
    %91 = vector.load %arg7[%c16_118, %c0_119] : memref<32x128xf32, #tpu.memory_space<vmem>>, vector<15x128xf32>
    tpu.vector_store %arg7[%c16_118, %c0_119], %90 {strides = array<i32>} : memref<32x128xf32, #tpu.memory_space<vmem>>, vector<15x128xf32>,
    %c80_120 = arith.constant 80 : index
    %c0_121 = arith.constant 0 : index
    %92 = vector.load %arg1[%c80_120, %c0_121] : memref<128x16xf32, #tpu.memory_space<vmem>>, vector<15x16xf32>
    %c48_122 = arith.constant 48 : index
    %c0_123 = arith.constant 0 : index
    %93 = vector.load %arg2[%c48_122, %c0_123] : memref<192x128xf32, #tpu.memory_space<vmem>>, vector<16x128xf32>
    %cst_124 = arith.constant dense<0.000000e+00> : vector<15x128xf32>
    %94 = tpu.matmul %92, %93, %cst_124 {dimension_numbers = #tpu.dot_dimension_numbers<[1], [0], [0], [1], [0, 0, 1, 1], [], []>} : vector<15x16xf32>, vector<16x128xf32>, vector<15x128xf32> -> vector<15x128xf32>
    %c17_125 = arith.constant 17 : index
    %c0_126 = arith.constant 0 : index
    %95 = vector.load %arg7[%c17_125, %c0_126] : memref<32x128xf32, #tpu.memory_space<vmem>>, vector<15x128xf32>
    %96 = arith.addf %95, %94 : vector<15x128xf32>
    %c17_127 = arith.constant 17 : index
    %c0_128 = arith.constant 0 : index
    %97 = vector.load %arg7[%c17_127, %c0_128] : memref<32x128xf32, #tpu.memory_space<vmem>>, vector<15x128xf32>
    tpu.vector_store %arg7[%c17_127, %c0_128], %96 {strides = array<i32>} : memref<32x128xf32, #tpu.memory_space<vmem>>, vector<15x128xf32>,
    %c80_129 = arith.constant 80 : index
    %c0_130 = arith.constant 0 : index
    %98 = vector.load %arg1[%c80_129, %c0_130] : memref<128x16xf32, #tpu.memory_space<vmem>>, vector<16x16xf32>
    %c64_131 = arith.constant 64 : index
    %c0_132 = arith.constant 0 : index
    %99 = vector.load %arg2[%c64_131, %c0_132] : memref<192x128xf32, #tpu.memory_space<vmem>>, vector<16x128xf32>
    %cst_133 = arith.constant dense<0.000000e+00> : vector<16x128xf32>
    %100 = tpu.matmul %98, %99, %cst_133 {dimension_numbers = #tpu.dot_dimension_numbers<[1], [0], [0], [1], [0, 0, 1, 1], [], []>} : vector<16x16xf32>, vector<16x128xf32>, vector<16x128xf32> -> vector<16x128xf32>
    %c16_134 = arith.constant 16 : index
    %c0_135 = arith.constant 0 : index
    %101 = vector.load %arg7[%c16_134, %c0_135] : memref<32x128xf32, #tpu.memory_space<vmem>>, vector<16x128xf32>
    %102 = arith.addf %101, %100 : vector<16x128xf32>
    %c16_136 = arith.constant 16 : index
    %c0_137 = arith.constant 0 : index
    %103 = vector.load %arg7[%c16_136, %c0_137] : memref<32x128xf32, #tpu.memory_space<vmem>>, vector<16x128xf32>
    tpu.vector_store %arg7[%c16_136, %c0_137], %102 {strides = array<i32>} : memref<32x128xf32, #tpu.memory_space<vmem>>, vector<16x128xf32>,
    %c81 = arith.constant 81 : index
    %c0_138 = arith.constant 0 : index
    %104 = vector.load %arg1[%c81, %c0_138] : memref<128x16xf32, #tpu.memory_space<vmem>>, vector<15x16xf32>
    %c80_139 = arith.constant 80 : index
    %c0_140 = arith.constant 0 : index
    %105 = vector.load %arg2[%c80_139, %c0_140] : memref<192x128xf32, #tpu.memory_space<vmem>>, vector<16x128xf32>
    %cst_141 = arith.constant dense<0.000000e+00> : vector<15x128xf32>
    %106 = tpu.matmul %104, %105, %cst_141 {dimension_numbers = #tpu.dot_dimension_numbers<[1], [0], [0], [1], [0, 0, 1, 1], [], []>} : vector<15x16xf32>, vector<16x128xf32>, vector<15x128xf32> -> vector<15x128xf32>
    %c16_142 = arith.constant 16 : index
    %c0_143 = arith.constant 0 : index
    %107 = vector.load %arg7[%c16_142, %c0_143] : memref<32x128xf32, #tpu.memory_space<vmem>>, vector<15x128xf32>
    %108 = arith.addf %107, %106 : vector<15x128xf32>
    %c16_144 = arith.constant 16 : index
    %c0_145 = arith.constant 0 : index
    %109 = vector.load %arg7[%c16_144, %c0_145] : memref<32x128xf32, #tpu.memory_space<vmem>>, vector<15x128xf32>
    tpu.vector_store %arg7[%c16_144, %c0_145], %108 {strides = array<i32>} : memref<32x128xf32, #tpu.memory_space<vmem>>, vector<15x128xf32>,
    %c96_146 = arith.constant 96 : index
    %c0_147 = arith.constant 0 : index
    %110 = vector.load %arg1[%c96_146, %c0_147] : memref<128x16xf32, #tpu.memory_space<vmem>>, vector<15x16xf32>
    %c96_148 = arith.constant 96 : index
    %c0_149 = arith.constant 0 : index
    %111 = vector.load %arg2[%c96_148, %c0_149] : memref<192x128xf32, #tpu.memory_space<vmem>>, vector<16x128xf32>
    %cst_150 = arith.constant dense<0.000000e+00> : vector<15x128xf32>
    %112 = tpu.matmul %110, %111, %cst_150 {dimension_numbers = #tpu.dot_dimension_numbers<[1], [0], [0], [1], [0, 0, 1, 1], [], []>} : vector<15x16xf32>, vector<16x128xf32>, vector<15x128xf32> -> vector<15x128xf32>
    %c17_151 = arith.constant 17 : index
    %c0_152 = arith.constant 0 : index
    %113 = vector.load %arg7[%c17_151, %c0_152] : memref<32x128xf32, #tpu.memory_space<vmem>>, vector<15x128xf32>
    %114 = arith.addf %113, %112 : vector<15x128xf32>
    %c17_153 = arith.constant 17 : index
    %c0_154 = arith.constant 0 : index
    %115 = vector.load %arg7[%c17_153, %c0_154] : memref<32x128xf32, #tpu.memory_space<vmem>>, vector<15x128xf32>
    tpu.vector_store %arg7[%c17_153, %c0_154], %114 {strides = array<i32>} : memref<32x128xf32, #tpu.memory_space<vmem>>, vector<15x128xf32>,
    %c96_155 = arith.constant 96 : index
    %c0_156 = arith.constant 0 : index
    %116 = vector.load %arg1[%c96_155, %c0_156] : memref<128x16xf32, #tpu.memory_space<vmem>>, vector<16x16xf32>
    %c112_157 = arith.constant 112 : index
    %c0_158 = arith.constant 0 : index
    %117 = vector.load %arg2[%c112_157, %c0_158] : memref<192x128xf32, #tpu.memory_space<vmem>>, vector<16x128xf32>
    %cst_159 = arith.constant dense<0.000000e+00> : vector<16x128xf32>
    %118 = tpu.matmul %116, %117, %cst_159 {dimension_numbers = #tpu.dot_dimension_numbers<[1], [0], [0], [1], [0, 0, 1, 1], [], []>} : vector<16x16xf32>, vector<16x128xf32>, vector<16x128xf32> -> vector<16x128xf32>
    %c16_160 = arith.constant 16 : index
    %c0_161 = arith.constant 0 : index
    %119 = vector.load %arg7[%c16_160, %c0_161] : memref<32x128xf32, #tpu.memory_space<vmem>>, vector<16x128xf32>
    %120 = arith.addf %119, %118 : vector<16x128xf32>
    %c16_162 = arith.constant 16 : index
    %c0_163 = arith.constant 0 : index
    %121 = vector.load %arg7[%c16_162, %c0_163] : memref<32x128xf32, #tpu.memory_space<vmem>>, vector<16x128xf32>
    tpu.vector_store %arg7[%c16_162, %c0_163], %120 {strides = array<i32>} : memref<32x128xf32, #tpu.memory_space<vmem>>, vector<16x128xf32>,
    %c97 = arith.constant 97 : index
    %c0_164 = arith.constant 0 : index
    %122 = vector.load %arg1[%c97, %c0_164] : memref<128x16xf32, #tpu.memory_space<vmem>>, vector<15x16xf32>
    %c128_165 = arith.constant 128 : index
    %c0_166 = arith.constant 0 : index
    %123 = vector.load %arg2[%c128_165, %c0_166] : memref<192x128xf32, #tpu.memory_space<vmem>>, vector<16x128xf32>
    %cst_167 = arith.constant dense<0.000000e+00> : vector<15x128xf32>
    %124 = tpu.matmul %122, %123, %cst_167 {dimension_numbers = #tpu.dot_dimension_numbers<[1], [0], [0], [1], [0, 0, 1, 1], [], []>} : vector<15x16xf32>, vector<16x128xf32>, vector<15x128xf32> -> vector<15x128xf32>
    %c16_168 = arith.constant 16 : index
    %c0_169 = arith.constant 0 : index
    %125 = vector.load %arg7[%c16_168, %c0_169] : memref<32x128xf32, #tpu.memory_space<vmem>>, vector<15x128xf32>
    %126 = arith.addf %125, %124 : vector<15x128xf32>
    %c16_170 = arith.constant 16 : index
    %c0_171 = arith.constant 0 : index
    %127 = vector.load %arg7[%c16_170, %c0_171] : memref<32x128xf32, #tpu.memory_space<vmem>>, vector<15x128xf32>
    tpu.vector_store %arg7[%c16_170, %c0_171], %126 {strides = array<i32>} : memref<32x128xf32, #tpu.memory_space<vmem>>, vector<15x128xf32>,
    %c112_172 = arith.constant 112 : index
    %c0_173 = arith.constant 0 : index
    %128 = vector.load %arg1[%c112_172, %c0_173] : memref<128x16xf32, #tpu.memory_space<vmem>>, vector<15x16xf32>
    %c144_174 = arith.constant 144 : index
    %c0_175 = arith.constant 0 : index
    %129 = vector.load %arg2[%c144_174, %c0_175] : memref<192x128xf32, #tpu.memory_space<vmem>>, vector<16x128xf32>
    %cst_176 = arith.constant dense<0.000000e+00> : vector<15x128xf32>
    %130 = tpu.matmul %128, %129, %cst_176 {dimension_numbers = #tpu.dot_dimension_numbers<[1], [0], [0], [1], [0, 0, 1, 1], [], []>} : vector<15x16xf32>, vector<16x128xf32>, vector<15x128xf32> -> vector<15x128xf32>
    %c17_177 = arith.constant 17 : index
    %c0_178 = arith.constant 0 : index
    %131 = vector.load %arg7[%c17_177, %c0_178] : memref<32x128xf32, #tpu.memory_space<vmem>>, vector<15x128xf32>
    %132 = arith.addf %131, %130 : vector<15x128xf32>
    %c17_179 = arith.constant 17 : index
    %c0_180 = arith.constant 0 : index
    %133 = vector.load %arg7[%c17_179, %c0_180] : memref<32x128xf32, #tpu.memory_space<vmem>>, vector<15x128xf32>
    tpu.vector_store %arg7[%c17_179, %c0_180], %132 {strides = array<i32>} : memref<32x128xf32, #tpu.memory_space<vmem>>, vector<15x128xf32>,
    %c112_181 = arith.constant 112 : index
    %c0_182 = arith.constant 0 : index
    %134 = vector.load %arg1[%c112_181, %c0_182] : memref<128x16xf32, #tpu.memory_space<vmem>>, vector<16x16xf32>
    %c160_183 = arith.constant 160 : index
    %c0_184 = arith.constant 0 : index
    %135 = vector.load %arg2[%c160_183, %c0_184] : memref<192x128xf32, #tpu.memory_space<vmem>>, vector<16x128xf32>
    %cst_185 = arith.constant dense<0.000000e+00> : vector<16x128xf32>
    %136 = tpu.matmul %134, %135, %cst_185 {dimension_numbers = #tpu.dot_dimension_numbers<[1], [0], [0], [1], [0, 0, 1, 1], [], []>} : vector<16x16xf32>, vector<16x128xf32>, vector<16x128xf32> -> vector<16x128xf32>
    %c16_186 = arith.constant 16 : index
    %c0_187 = arith.constant 0 : index
    %137 = vector.load %arg7[%c16_186, %c0_187] : memref<32x128xf32, #tpu.memory_space<vmem>>, vector<16x128xf32>
    %138 = arith.addf %137, %136 : vector<16x128xf32>
    %c16_188 = arith.constant 16 : index
    %c0_189 = arith.constant 0 : index
    %139 = vector.load %arg7[%c16_188, %c0_189] : memref<32x128xf32, #tpu.memory_space<vmem>>, vector<16x128xf32>
    tpu.vector_store %arg7[%c16_188, %c0_189], %138 {strides = array<i32>} : memref<32x128xf32, #tpu.memory_space<vmem>>, vector<16x128xf32>,
    %c113 = arith.constant 113 : index
    %c0_190 = arith.constant 0 : index
    %140 = vector.load %arg1[%c113, %c0_190] : memref<128x16xf32, #tpu.memory_space<vmem>>, vector<15x16xf32>
    %c176_191 = arith.constant 176 : index
    %c0_192 = arith.constant 0 : index
    %141 = vector.load %arg2[%c176_191, %c0_192] : memref<192x128xf32, #tpu.memory_space<vmem>>, vector<16x128xf32>
    %cst_193 = arith.constant dense<0.000000e+00> : vector<15x128xf32>
    %142 = tpu.matmul %140, %141, %cst_193 {dimension_numbers = #tpu.dot_dimension_numbers<[1], [0], [0], [1], [0, 0, 1, 1], [], []>} : vector<15x16xf32>, vector<16x128xf32>, vector<15x128xf32> -> vector<15x128xf32>
    %c16_194 = arith.constant 16 : index
    %c0_195 = arith.constant 0 : index
    %143 = vector.load %arg7[%c16_194, %c0_195] : memref<32x128xf32, #tpu.memory_space<vmem>>, vector<15x128xf32>
    %144 = arith.addf %143, %142 : vector<15x128xf32>
    %c16_196 = arith.constant 16 : index
    %c0_197 = arith.constant 0 : index
    %145 = vector.load %arg7[%c16_196, %c0_197] : memref<32x128xf32, #tpu.memory_space<vmem>>, vector<15x128xf32>
    tpu.vector_store %arg7[%c16_196, %c0_197], %144 {strides = array<i32>} : memref<32x128xf32, #tpu.memory_space<vmem>>, vector<15x128xf32>,
    %c0_198 = arith.constant 0 : index
    %c0_199 = arith.constant 0 : index
    %146 = tpu.strided_load %arg7[%c0_198, %c0_199] {strides = array<i32: 2, 1>} : memref<32x128xf32, #tpu.memory_space<vmem>>, vector<16x128xf32>
    %c1_200 = arith.constant 1 : index
    %c0_201 = arith.constant 0 : index
    %147 = tpu.strided_load %arg7[%c1_200, %c0_201] {strides = array<i32: 2, 1>} : memref<32x128xf32, #tpu.memory_space<vmem>>, vector<16x128xf32>
    %148 = arith.maximumf %146, %147 : vector<16x128xf32>
    %149 = vector.extract_strided_slice %148 {offsets = [0, 0], sizes = [16, 64], strides = [1, 1]} : vector<16x128xf32> to vector<16x64xf32>
    %150 = vector.extract_strided_slice %148 {offsets = [0, 64], sizes = [16, 64], strides = [1, 1]} : vector<16x128xf32> to vector<16x64xf32>
    %151 = arith.maximumf %149, %150 : vector<16x64xf32>
    %c0_202 = arith.constant 0 : index
    %c0_203 = arith.constant 0 : index
    %152 = vector.load %arg3[%c0_202, %c0_203] : memref<1x64xf32, #tpu.memory_space<vmem>>, vector<1x64xf32>
    %153 = vector.broadcast %152 : vector<1x64xf32> to vector<16x64xf32>
    %154 = arith.addf %151, %153 : vector<16x64xf32>
    %cst_204 = arith.constant 0.000000e+00 : f32
    %155 = vector.broadcast %cst_204 : f32 to vector<16x64xf32>
    %156 = arith.maximumf %154, %155 : vector<16x64xf32>
    %c0_205 = arith.constant 0 : index
    %c0_206 = arith.constant 0 : index
    %157 = vector.load %arg8[%c0_205, %c0_206] : memref<16x64xf32, #tpu.memory_space<vmem>>, vector<16x64xf32>
    tpu.vector_store %arg8[%c0_205, %c0_206], %156 {strides = array<i32>} : memref<16x64xf32, #tpu.memory_space<vmem>>, vector<16x64xf32>,
    %cst_207 = arith.constant 0.000000e+00 : f32
    %158 = vector.broadcast %cst_207 : f32 to vector<2x10xf32>
    %c0_208 = arith.constant 0 : index
    %c0_209 = arith.constant 0 : index
    %159 = tpu.strided_load %arg8[%c0_208, %c0_209] {strides = array<i32: 8, 1>} : memref<16x64xf32, #tpu.memory_space<vmem>>, vector<2x64xf32>
    %c0_210 = arith.constant 0 : index
    %c0_211 = arith.constant 0 : index
    %160 = vector.load %arg4[%c0_210, %c0_211] : memref<512x10xf32, #tpu.memory_space<vmem>>, vector<64x10xf32>
    %cst_212 = arith.constant dense<0.000000e+00> : vector<2x10xf32>
    %161 = tpu.matmul %159, %160, %cst_212 {dimension_numbers = #tpu.dot_dimension_numbers<[1], [0], [0], [1], [0, 0, 1, 1], [], []>} : vector<2x64xf32>, vector<64x10xf32>, vector<2x10xf32> -> vector<2x10xf32>
    %162 = arith.addf %158, %161 : vector<2x10xf32>
    %c1_213 = arith.constant 1 : index
    %c0_214 = arith.constant 0 : index
    %163 = tpu.strided_load %arg8[%c1_213, %c0_214] {strides = array<i32: 8, 1>} : memref<16x64xf32, #tpu.memory_space<vmem>>, vector<2x64xf32>
    %c64_215 = arith.constant 64 : index
    %c0_216 = arith.constant 0 : index
    %164 = vector.load %arg4[%c64_215, %c0_216] : memref<512x10xf32, #tpu.memory_space<vmem>>, vector<64x10xf32>
    %cst_217 = arith.constant dense<0.000000e+00> : vector<2x10xf32>
    %165 = tpu.matmul %163, %164, %cst_217 {dimension_numbers = #tpu.dot_dimension_numbers<[1], [0], [0], [1], [0, 0, 1, 1], [], []>} : vector<2x64xf32>, vector<64x10xf32>, vector<2x10xf32> -> vector<2x10xf32>
    %166 = arith.addf %162, %165 : vector<2x10xf32>
    %c2 = arith.constant 2 : index
    %c0_218 = arith.constant 0 : index
    %167 = tpu.strided_load %arg8[%c2, %c0_218] {strides = array<i32: 8, 1>} : memref<16x64xf32, #tpu.memory_space<vmem>>, vector<2x64xf32>
    %c128_219 = arith.constant 128 : index
    %c0_220 = arith.constant 0 : index
    %168 = vector.load %arg4[%c128_219, %c0_220] : memref<512x10xf32, #tpu.memory_space<vmem>>, vector<64x10xf32>
    %cst_221 = arith.constant dense<0.000000e+00> : vector<2x10xf32>
    %169 = tpu.matmul %167, %168, %cst_221 {dimension_numbers = #tpu.dot_dimension_numbers<[1], [0], [0], [1], [0, 0, 1, 1], [], []>} : vector<2x64xf32>, vector<64x10xf32>, vector<2x10xf32> -> vector<2x10xf32>
    %170 = arith.addf %166, %169 : vector<2x10xf32>
    %c3 = arith.constant 3 : index
    %c0_222 = arith.constant 0 : index
    %171 = tpu.strided_load %arg8[%c3, %c0_222] {strides = array<i32: 8, 1>} : memref<16x64xf32, #tpu.memory_space<vmem>>, vector<2x64xf32>
    %c192 = arith.constant 192 : index
    %c0_223 = arith.constant 0 : index
    %172 = vector.load %arg4[%c192, %c0_223] : memref<512x10xf32, #tpu.memory_space<vmem>>, vector<64x10xf32>
    %cst_224 = arith.constant dense<0.000000e+00> : vector<2x10xf32>
    %173 = tpu.matmul %171, %172, %cst_224 {dimension_numbers = #tpu.dot_dimension_numbers<[1], [0], [0], [1], [0, 0, 1, 1], [], []>} : vector<2x64xf32>, vector<64x10xf32>, vector<2x10xf32> -> vector<2x10xf32>
    %174 = arith.addf %170, %173 : vector<2x10xf32>
    %c4 = arith.constant 4 : index
    %c0_225 = arith.constant 0 : index
    %175 = tpu.strided_load %arg8[%c4, %c0_225] {strides = array<i32: 8, 1>} : memref<16x64xf32, #tpu.memory_space<vmem>>, vector<2x64xf32>
    %c256 = arith.constant 256 : index
    %c0_226 = arith.constant 0 : index
    %176 = vector.load %arg4[%c256, %c0_226] : memref<512x10xf32, #tpu.memory_space<vmem>>, vector<64x10xf32>
    %cst_227 = arith.constant dense<0.000000e+00> : vector<2x10xf32>
    %177 = tpu.matmul %175, %176, %cst_227 {dimension_numbers = #tpu.dot_dimension_numbers<[1], [0], [0], [1], [0, 0, 1, 1], [], []>} : vector<2x64xf32>, vector<64x10xf32>, vector<2x10xf32> -> vector<2x10xf32>
    %178 = arith.addf %174, %177 : vector<2x10xf32>
    %c5 = arith.constant 5 : index
    %c0_228 = arith.constant 0 : index
    %179 = tpu.strided_load %arg8[%c5, %c0_228] {strides = array<i32: 8, 1>} : memref<16x64xf32, #tpu.memory_space<vmem>>, vector<2x64xf32>
    %c320 = arith.constant 320 : index
    %c0_229 = arith.constant 0 : index
    %180 = vector.load %arg4[%c320, %c0_229] : memref<512x10xf32, #tpu.memory_space<vmem>>, vector<64x10xf32>
    %cst_230 = arith.constant dense<0.000000e+00> : vector<2x10xf32>
    %181 = tpu.matmul %179, %180, %cst_230 {dimension_numbers = #tpu.dot_dimension_numbers<[1], [0], [0], [1], [0, 0, 1, 1], [], []>} : vector<2x64xf32>, vector<64x10xf32>, vector<2x10xf32> -> vector<2x10xf32>
    %182 = arith.addf %178, %181 : vector<2x10xf32>
    %c6 = arith.constant 6 : index
    %c0_231 = arith.constant 0 : index
    %183 = tpu.strided_load %arg8[%c6, %c0_231] {strides = array<i32: 8, 1>} : memref<16x64xf32, #tpu.memory_space<vmem>>, vector<2x64xf32>
    %c384 = arith.constant 384 : index
    %c0_232 = arith.constant 0 : index
    %184 = vector.load %arg4[%c384, %c0_232] : memref<512x10xf32, #tpu.memory_space<vmem>>, vector<64x10xf32>
    %cst_233 = arith.constant dense<0.000000e+00> : vector<2x10xf32>
    %185 = tpu.matmul %183, %184, %cst_233 {dimension_numbers = #tpu.dot_dimension_numbers<[1], [0], [0], [1], [0, 0, 1, 1], [], []>} : vector<2x64xf32>, vector<64x10xf32>, vector<2x10xf32> -> vector<2x10xf32>
    %186 = arith.addf %182, %185 : vector<2x10xf32>
    %c7 = arith.constant 7 : index
    %c0_234 = arith.constant 0 : index
    %187 = tpu.strided_load %arg8[%c7, %c0_234] {strides = array<i32: 8, 1>} : memref<16x64xf32, #tpu.memory_space<vmem>>, vector<2x64xf32>
    %c448 = arith.constant 448 : index
    %c0_235 = arith.constant 0 : index
    %188 = vector.load %arg4[%c448, %c0_235] : memref<512x10xf32, #tpu.memory_space<vmem>>, vector<64x10xf32>
    %cst_236 = arith.constant dense<0.000000e+00> : vector<2x10xf32>
    %189 = tpu.matmul %187, %188, %cst_236 {dimension_numbers = #tpu.dot_dimension_numbers<[1], [0], [0], [1], [0, 0, 1, 1], [], []>} : vector<2x64xf32>, vector<64x10xf32>, vector<2x10xf32> -> vector<2x10xf32>
    %190 = arith.addf %186, %189 : vector<2x10xf32>
    %c0_237 = arith.constant 0 : index
    %c0_238 = arith.constant 0 : index
    %191 = vector.load %arg5[%c0_237, %c0_238] : memref<1x10xf32, #tpu.memory_space<vmem>>, vector<1x10xf32>
    %192 = vector.broadcast %191 : vector<1x10xf32> to vector<2x10xf32>
    %193 = arith.addf %190, %192 : vector<2x10xf32>
    %c0_239 = arith.constant 0 : index
    %c0_240 = arith.constant 0 : index
    %194 = vector.load %arg6[%c0_239, %c0_240] : memref<2x10xf32, #tpu.memory_space<vmem>>, vector<2x10xf32>
    tpu.vector_store %arg6[%c0_239, %c0_240], %193 {strides = array<i32>} : memref<2x10xf32, #tpu.memory_space<vmem>>, vector<2x10xf32>,
    return
  }
  func.func @transform_0(%arg0: i32) -> (i32, i32) {
    %c0_i32 = arith.constant 0 : i32
    %c0_i32_0 = arith.constant 0 : i32
    %c0_i32_1 = arith.constant 0 : i32
    return %c0_i32, %c0_i32_0 : i32, i32
  }
  func.func @transform_1(%arg0: i32) -> (i32, i32) {
    %c0_i32 = arith.constant 0 : i32
    %c0_i32_0 = arith.constant 0 : i32
    %c0_i32_1 = arith.constant 0 : i32
    return %c0_i32, %c0_i32_0 : i32, i32
  }
  func.func @transform_2(%arg0: i32) -> (i32, i32) {
    %c0_i32 = arith.constant 0 : i32
    %c0_i32_0 = arith.constant 0 : i32
    %c0_i32_1 = arith.constant 0 : i32
    return %c0_i32, %c0_i32_0 : i32, i32
  }
  func.func @transform_3(%arg0: i32) -> (i32, i32) {
    %c0_i32 = arith.constant 0 : i32
    %c0_i32_0 = arith.constant 0 : i32
    %c0_i32_1 = arith.constant 0 : i32
    return %c0_i32, %c0_i32_0 : i32, i32
  }
  func.func @transform_4(%arg0: i32) -> (i32, i32) {
    %c0_i32 = arith.constant 0 : i32
    %c0_i32_0 = arith.constant 0 : i32
    %c0_i32_1 = arith.constant 0 : i32
    return %c0_i32, %c0_i32_0 : i32, i32
  }
  func.func @transform_5(%arg0: i32) -> (i32, i32) {
    %c0_i32 = arith.constant 0 : i32
    %c0_i32_0 = arith.constant 0 : i32
    %c0_i32_1 = arith.constant 0 : i32
    return %c0_i32, %c0_i32_0 : i32, i32
  }
}

</mosaic_0001>

<bundles_post_ra>
// kernel: _fused_branch_forward.1
= control target key start
LH: loop header
LB: loop body
LE: loop exit
PB: predicated region body
PF: predicated region fallthrough
CT: control target
= control target key end

     0   :  { %vm29_vm0 = vcmask 130048   ;;  %v3703_v6 = vmov 0.0   ;;  %s4399_s0 = inlined_call_operand.vmem [shape: f32[128,16], index: 0, kind: input, shape index: {}]   ;;  %s4400_s1 = inlined_call_operand.vmem [shape: f32[192,128], index: 1, kind: input, shape index: {}]   ;;  %s4401_s2 = inlined_call_operand.vmem [shape: f32[1,64], index: 2, kind: input, shape index: {}]   ;;  %s4402_s3 = inlined_call_operand.vmem [shape: f32[512,10], index: 3, kind: input, shape index: {}]   ;;  %s4403_s4 = inlined_call_operand.vmem [shape: f32[1,10], index: 4, kind: input, shape index: {}]   ;;  %s4404_s5 = inlined_call_operand.hbm [shape: f32[2,10], index: 5, kind: output, shape index: {}]  }
   0x1   :  { %v27_v0 = vld [vmem:[%s4400_s1] sm:$0xff]  ;;  %v28_v1 = vld [vmem:[%s4400_s1 + $0x8] sm:$0xff]  ;;  %22 = vst [vmem:[#allocation2 + $0x8] sm:$0xff] %v3703_v6  ;;  %21 = vst [vmem:[#allocation2] sm:$0xff] %v3703_v6 }
   0x2   :  { %v25_v2 = vld [vmem:[%s4399_s0] sm:$0xff]  ;;  %v3747_v3 = vpack.c.bf16 %v28_v1, %v27_v0  ;;  %v211_v5 = vld [vmem:[%s4400_s1 + $0x28] sm:$0xff]  ;;  %23 = vst [vmem:[#allocation2 + $0x10] sm:$0xff] %v3703_v6  ;;  %24 = vst [vmem:[#allocation2 + $0x18] sm:$0xff] %v3703_v6 }
   0x3   :  { %3166 = vmatprep.mubr.msk.f32.mxu0 %vm29_vm0, %v25_v2  ;;  %v210_v4 = vld [vmem:[%s4400_s1 + $0x20] sm:$0xff]  ;;  %3173 = vmatprep.mubr.msk.f32.mxu1 %vm29_vm0, %v25_v2  ;;  %v393_v9 = vld [vmem:[%s4400_s1 + $0x48] sm:$0xff]  ;;  %v119_v10 = vld [vmem:[%s4400_s1 + $0x10] sm:$0xff] }
   0x4   :  { %v3761_v7 = vpack.c.bf16 %v211_v5, %v210_v4  ;;  %v392_v8 = vld [vmem:[%s4400_s1 + $0x40] sm:$0xff]  ;;  %3483 = vmatprep.subr.bf16.mxu0 %v3747_v3  ;;  %v120_v11 = vld [vmem:[%s4400_s1 + $0x18] sm:$0xff]  ;;  %v26_v12 = vld [vmem:[%s4399_s0 + $0x8] sm:$0x7f] }
   0x5   :  { %3485 = vmatpush3.bf16.msra.mxu0 %v3747_v3  ;;  %v3780_v13 = vpack.c.bf16 %v120_v11, %v119_v10  ;;  %v208_v14 = vld [vmem:[%s4399_s0 + $0x1] sm:$0xff]  ;;  %v3786_v15 = vpack.c.bf16 %v393_v9, %v392_v8  ;;  %v301_v16 = vld [vmem:[%s4400_s1 + $0x30] sm:$0xff]  ;;  %v302_v19 = vld [vmem:[%s4400_s1 + $0x38] sm:$0xff] }
   0x6   :  { %3491 = vmatprep.subr.bf16.mxu0 %v3761_v7  ;;  %v574_v17 = vld [vmem:[%s4400_s1 + $0x60] sm:$0xff]  ;;  %v575_v18 = vld [vmem:[%s4400_s1 + $0x68] sm:$0xff]  ;;  %v3806_v21 = vpack.c.bf16 %v302_v19, %v301_v16  ;;  %v483_v23 = vld [vmem:[%s4400_s1 + $0x50] sm:$0xff] }
   0x7   :  { %3487 = vmatprep.subr.bf16.mxu1 %v3780_v13  ;;  %v118_v20 = vld [vmem:[%s4399_s0 + $0x8] sm:$0xff]  ;;  %v484_v24 = vld [vmem:[%s4400_s1 + $0x58] sm:$0xff]  ;;  %v390_v25 = vld [vmem:[%s4399_s0 + $0x10] sm:$0xff]  ;;  %v3823_v26 = vpack.c.bf16 %v575_v18, %v574_v17 }
   0x8   :  { %3167 = vmatmul.mubr.msk.f32.vlgmr.msra.gmra.mrb[0].mxu0 %vm29_vm0, %v26_v12  ;;  %3489 = vmatpush3.bf16.msra.mxu1 %v3780_v13  ;;  %v209_v22 = vld [vmem:[%s4399_s0 + $0x9] sm:$0x7f]  ;;  %v756_v27 = vld [vmem:[%s4400_s1 + $0x80] sm:$0xff]  ;;  %v3833_v29 = vpack.c.bf16 %v484_v24, %v483_v23  ;;  %v300_v30 = vld [vmem:[%s4399_s0 + $0x18] sm:$0x7f] }
   0x9   :  { %3493 = vmatpush3.bf16.msra.mxu0 %v3761_v7  ;;  %3180 = vmatprep.mubr.msk.f32.mxu0 %vm29_vm0, %v208_v14  ;;  %v757_v28 = vld [vmem:[%s4400_s1 + $0x88] sm:$0xff]  ;;  %v665_v31 = vld [vmem:[%s4400_s1 + $0x70] sm:$0xff]  ;;  %v666_v32 = vld [vmem:[%s4400_s1 + $0x78] sm:$0xff] }
   0xa   :  { %3499 = vmatprep.subr.bf16.mxu0 %v3786_v15  ;;  %3495 = vmatprep.subr.bf16.mxu1 %v3806_v21  ;;  %v391_v33 = vld [vmem:[%s4399_s0 + $0x18] sm:$0xff]  ;;  %v572_v34 = vld [vmem:[%s4399_s0 + $0x20] sm:$0xff]  ;;  %v3855_v35 = vpack.c.bf16 %v757_v28, %v756_v27  ;;  %v939_v37 = vld [vmem:[%s4400_s1 + $0xa8] sm:$0xff]  ;;  %v3869_v39 = vpack.c.bf16 %v666_v32, %v665_v31 }
   0xb   :  { %3174 = vmatmul.mubr.msk.f32.vlgmr.msra.gmra.mrb[0].mxu1 %vm29_vm0, %v118_v20  ;;  %v938_v36 = vld [vmem:[%s4400_s1 + $0xa0] sm:$0xff]  ;;  %v481_v38 = vld [vmem:[%s4399_s0 + $0x11] sm:$0xff]  ;;  %v482_v40 = vld [vmem:[%s4399_s0 + $0x19] sm:$0x7f] }
   0xc   :  { %3181 = vmatmul.mubr.msk.f32.vlgmr.msra.gmra.mrb[2].mxu0 %vm29_vm0, %v209_v22  ;;  %3497 = vmatpush3.bf16.msra.mxu1 %v3806_v21  ;;  %v847_v41 = vld [vmem:[%s4400_s1 + $0x90] sm:$0xff]  ;;  %v848_v42 = vld [vmem:[%s4400_s1 + $0x98] sm:$0xff]  ;;  %v573_v43 = vld [vmem:[%s4399_s0 + $0x28] sm:$0x7f]  ;;  %v3891_v45 = vpack.c.bf16 %v939_v37, %v938_v36 }
   0xd   :  { %3501 = vmatpush3.bf16.msra.mxu0 %v3786_v15  ;;  %3194 = vmatprep.mubr.msk.f32.mxu0 %vm29_vm0, %v390_v25  ;;  %v754_v44 = vld [vmem:[%s4399_s0 + $0x21] sm:$0xff]  ;;  %v3896_v46 = vpack.c.bf16 %v848_v42, %v847_v41  ;;  %v1029_v48 = vld [vmem:[%s4400_s1 + $0xb0] sm:$0xff]  ;;  %v1030_v49 = vld [vmem:[%s4400_s1 + $0xb8] sm:$0xff] }
   0xe   :  { %3507 = vmatprep.subr.bf16.mxu0 %v3823_v26  ;;  %3187 = vmatprep.mubr.msk.f32.mxu1 %vm29_vm0, %v390_v25  ;;  %v664_v47 = vld [vmem:[%s4399_s0 + $0x28] sm:$0xff]  ;;  %v936_v51 = vld [vmem:[%s4399_s0 + $0x30] sm:$0xff] }
   0xf   :  { %3188 = vmatmul.mubr.msk.f32.vlgmr.msra.gmra.mrb[2].mxu1 %vm29_vm0, %v300_v30  ;;  %3503 = vmatprep.subr.bf16.mxu1 %v3833_v29  ;;  %v755_v50 = vld [vmem:[%s4399_s0 + $0x29] sm:$0x7f] }
  0x10   :  { %3195 = vmatmul.mubr.msk.f32.vlgmr.msra.gmra.mrb[4].mxu0 %vm29_vm0, %v391_v33  ;;  %3505 = vmatpush3.bf16.msra.mxu1 %v3833_v29 }
  0x11   :  { %3509 = vmatpush3.bf16.msra.mxu0 %v3823_v26  ;;  %3208 = vmatprep.mubr.msk.f32.mxu0 %vm29_vm0, %v572_v34 }
  0x12   :  { %3515 = vmatprep.subr.bf16.mxu0 %v3855_v35  ;;  %3201 = vmatprep.mubr.msk.f32.mxu1 %vm29_vm0, %v481_v38 }
  0x13   :  { %3202 = vmatmul.mubr.msk.f32.vlgmr.msra.gmra.mrb[4].mxu1 %vm29_vm0, %v482_v40  ;;  %3511 = vmatprep.subr.bf16.mxu1 %v3869_v39 }
  0x14   :  { %3209 = vmatmul.mubr.msk.f32.vlgmr.msra.gmra.mrb[6].mxu0 %vm29_vm0, %v573_v43  ;;  %3513 = vmatpush3.bf16.msra.mxu1 %v3869_v39 }
  0x15   :  { %3517 = vmatpush3.bf16.msra.mxu0 %v3855_v35  ;;  %3222 = vmatprep.mubr.msk.f32.mxu0 %vm29_vm0, %v754_v44 }
  0x16   :  { %3523 = vmatprep.subr.bf16.mxu0 %v3891_v45  ;;  %3215 = vmatprep.mubr.msk.f32.mxu1 %vm29_vm0, %v572_v34 }
  0x17   :  { %10 = vsyncpa [#allocation5], 0  ;;  %3216 = vmatmul.mubr.msk.f32.vlgmr.msra.gmra.mrb[6].mxu1 %vm29_vm0, %v664_v47  ;;  %3519 = vmatprep.subr.bf16.mxu1 %v3896_v46  ;;  %v3921_v52 = vpack.c.bf16 %v1030_v49, %v1029_v48  ;;  %v846_v53 = vld [vmem:[%s4399_s0 + $0x38] sm:$0x7f]  ;;  %v1118_v55 = vld [vmem:[%s4399_s0 + $0x40] sm:$0xff]  ;;  %s3705_s25 = smov 64  }
  0x18   :  { %3223 = vmatmul.mubr.msk.f32.vlgmr.msra.gmra.mrb[8].mxu0 %vm29_vm0, %v755_v50  ;;  %3521 = vmatpush3.bf16.msra.mxu1 %v3896_v46  ;;  %v937_v54 = vld [vmem:[%s4399_s0 + $0x38] sm:$0xff]  ;;  %v1119_v58 = vld [vmem:[%s4399_s0 + $0x48] sm:$0x7f]  ;;  %v1391_v62 = vld [vmem:[%s4399_s0 + $0x50] sm:$0xff]  ;;  %vm3706_vm1 = vmmov 0   ;;  %vm2240_vm2 = vcmask 523264  }
  0x19   :  { %3525 = vmatpush3.bf16.msra.mxu0 %v3891_v45  ;;  %3236 = vmatprep.mubr.msk.f32.mxu0 %vm29_vm0, %v936_v51  ;;  %v1027_v56 = vld [vmem:[%s4399_s0 + $0x31] sm:$0xff]  ;;  %v1028_v57 = vld [vmem:[%s4399_s0 + $0x39] sm:$0x7f]  ;;  %v1300_v59 = vld [vmem:[%s4399_s0 + $0x41] sm:$0xff]  ;;  %s3707_s12 = smov [#allocation4]   ;;  %vm2920_vm3 = vcmask 74752  }
  0x1a   :  { %3531 = vmatprep.subr.bf16.mxu0 %v3747_v3  ;;  %3229 = vmatprep.mubr.msk.f32.mxu1 %vm29_vm0, %v936_v51  ;;  %v1210_v60 = vld [vmem:[%s4399_s0 + $0x48] sm:$0xff]  ;;  %v1392_v63 = vld [vmem:[%s4399_s0 + $0x58] sm:$0x7f]  ;;  %v1664_v2 = vld [vmem:[%s4399_s0 + $0x60] sm:$0xff]  ;;  %s2928_s13 = sshll.u32 %s3707_s12, 4  ;;  %s2929_s13 = int_to_ptr.vmem [resolvable:$true] %s2928_s13 }
  0x1b   :  { %3230 = vmatmul.mubr.msk.f32.vlgmr.msra.gmra.mrb[8].mxu1 %vm29_vm0, %v846_v53  ;;  %3527 = vmatprep.subr.bf16.mxu1 %v3921_v52  ;;  %v1301_v61 = vld [vmem:[%s4399_s0 + $0x49] sm:$0x7f]  ;;  %v1483_v0 = vld [vmem:[%s4399_s0 + $0x58] sm:$0xff]  ;;  %v1846_v5 = vld [vmem:[%s4399_s0 + $0x61] sm:$0xff]  ;;  %s3679_s14 = scalar_lea.vmem %s2929_s13, 32  ;;  %p3684_p1 = scmp.lt.s32.totalorder %s2929_s13, %s2929_s13 }
  0x1c   :  { %3237 = vmatmul.mubr.msk.f32.vlgmr.msra.gmra.mrb[10].mxu0 %vm29_vm0, %v937_v54  ;;  %3529 = vmatpush3.bf16.msra.mxu1 %v3921_v52  ;;  %v1573_v1 = vld [vmem:[%s4399_s0 + $0x51] sm:$0xff]  ;;  %v1665_v4 = vld [vmem:[%s4399_s0 + $0x68] sm:$0x7f]  ;;  %v1204_v47 = vld [vmem:[#allocation2 + $0x19] sm:$0x7f]  ;;  %p3680_p0 = scmp.ne.s32.totalorder %s2929_s13, %s3679_s14  ;;  %p3685_p2 = scmp.lt.s32.totalorder %s3679_s14, %s3679_s14 }
  0x1d   :  { %3533 = vmatpush3.bf16.msra.mxu0 %v3747_v3  ;;  %3250 = vmatprep.mubr.msk.f32.mxu0 %vm29_vm0, %v1118_v55  ;;  %v1574_v3 = vld [vmem:[%s4399_s0 + $0x59] sm:$0x7f]  ;;  %v1847_v8 = vld [vmem:[%s4399_s0 + $0x69] sm:$0x7f]  ;;  %v1937_v9 = vld [vmem:[%s4399_s0 + $0x70] sm:$0xff] }
  0x1e   :  { %3243 = vmatprep.mubr.msk.f32.mxu1 %vm29_vm0, %v1027_v56  ;;  %3535 = vmatprep.subr.bf16.mxu1 %v3780_v13  ;;  %v1938_v10 = vld [vmem:[%s4399_s0 + $0x78] sm:$0x7f]  ;;  %v112_v14 = vld [vmem:[#allocation2 + $0x9] sm:$0x7f]  ;;  %p3686_p3 = por %p3685_p2, %p3684_p1 }
  0x1f   :  { %3244 = vmatmul.mubr.msk.f32.vlgmr.msra.gmra.mrb[10].mxu1 %vm29_vm0, %v1028_v57  ;;  %3539 = vmatprep.subr.bf16.mxu0 %v3761_v7  ;;  %v2029_v11 = vld [vmem:[%s4399_s0 + $0x78] sm:$0xff] }
  0x20   :  { %3251 = vmatmul.mubr.msk.f32.vlgmr.msra.gmra.mrb[12].mxu0 %vm29_vm0, %v1119_v58  ;;  %3537 = vmatpush3.bf16.msra.mxu1 %v3780_v13  ;;  %v2119_v12 = vld [vmem:[%s4399_s0 + $0x71] sm:$0xff]  ;;  %v2120_v13 = vld [vmem:[%s4399_s0 + $0x79] sm:$0x7f]  ;;  %p3687_p4 = pnand %p3686_p3, %p3680_p0 }
  0x21   :  { %3257 = vmatprep.mubr.msk.f32.mxu1 %vm29_vm0, %v1118_v55  ;;  %3541 = vmatpush3.bf16.msra.mxu0 %v3761_v7  ;;  %v1756_v7 = vld [vmem:[%s4399_s0 + $0x68] sm:$0xff]  ;;  %v1203_v48 = vld [vmem:[#allocation2 + $0x11] sm:$0xff] }
  0x22   :  { %3264 = vmatprep.mubr.msk.f32.mxu0 %vm29_vm0, %v1300_v59  ;;  %3543 = vmatprep.subr.bf16.mxu1 %v3806_v21 }
  0x23   :  { %3258 = vmatmul.mubr.msk.f32.vlgmr.msra.gmra.mrb[12].mxu1 %vm29_vm0, %v1210_v60  ;;  %3547 = vmatprep.subr.bf16.mxu0 %v3786_v15 }
  0x24   :  { %3265 = vmatmul.mubr.msk.f32.vlgmr.msra.gmra.mrb[14].mxu0 %vm29_vm0, %v1301_v61  ;;  %3545 = vmatpush3.bf16.msra.mxu1 %v3806_v21 }
  0x25   :  { %3271 = vmatprep.mubr.msk.f32.mxu1 %vm29_vm0, %v1391_v62  ;;  %3549 = vmatpush3.bf16.msra.mxu0 %v3786_v15  ;;  %v111_v15 = vld [vmem:[#allocation2 + $0x1] sm:$0xff] }
  0x26   :  { %3278 = vmatprep.mubr.msk.f32.mxu0 %vm29_vm0, %v1391_v62  ;;  %3551 = vmatprep.subr.bf16.mxu1 %v3833_v29 }
  0x27   :  { %3272 = vmatmul.mubr.msk.f32.vlgmr.msra.gmra.mrb[14].mxu1 %vm29_vm0, %v1392_v63  ;;  %3555 = vmatprep.subr.bf16.mxu0 %v3823_v26 }
  0x28   :  { %3279 = vmatmul.mubr.msk.f32.vlgmr.msra.gmra.mrb[16].mxu0 %vm29_vm0, %v1483_v0  ;;  %3553 = vmatpush3.bf16.msra.mxu1 %v3833_v29 }
  0x29   :  { %3285 = vmatprep.mubr.msk.f32.mxu1 %vm29_vm0, %v1573_v1  ;;  %3557 = vmatpush3.bf16.msra.mxu0 %v3823_v26 }
  0x2a   :  { %3292 = vmatprep.mubr.msk.f32.mxu0 %vm29_vm0, %v1664_v2  ;;  %3559 = vmatprep.subr.bf16.mxu1 %v3869_v39 }
  0x2b   :  { %3286 = vmatmul.mubr.msk.f32.vlgmr.msra.gmra.mrb[16].mxu1 %vm29_vm0, %v1574_v3  ;;  %3563 = vmatprep.subr.bf16.mxu0 %v3855_v35 }
  0x2c   :  { %3293 = vmatmul.mubr.msk.f32.vlgmr.msra.gmra.mrb[18].mxu0 %vm29_vm0, %v1665_v4  ;;  %3561 = vmatpush3.bf16.msra.mxu1 %v3869_v39 }
  0x2d   :  { %3299 = vmatprep.mubr.msk.f32.mxu1 %vm29_vm0, %v1664_v2  ;;  %3565 = vmatpush3.bf16.msra.mxu0 %v3855_v35 }
  0x2e   :  { %3306 = vmatprep.mubr.msk.f32.mxu0 %vm29_vm0, %v1846_v5  ;;  %3567 = vmatprep.subr.bf16.mxu1 %v3896_v46 }
  0x2f   :  { %3300 = vmatmul.mubr.msk.f32.vlgmr.msra.gmra.mrb[18].mxu1 %vm29_vm0, %v1756_v7  ;;  %3571 = vmatprep.subr.bf16.mxu0 %v3891_v45 }
  0x30   :  { %3307 = vmatmul.mubr.msk.f32.vlgmr.msra.gmra.mrb[20].mxu0 %vm29_vm0, %v1847_v8  ;;  %3569 = vmatpush3.bf16.msra.mxu1 %v3896_v46 }
  0x31   :  { %3313 = vmatprep.mubr.msk.f32.mxu1 %vm29_vm0, %v1937_v9  ;;  %3573 = vmatpush3.bf16.msra.mxu0 %v3891_v45 }
  0x32   :  { %3320 = vmatprep.mubr.msk.f32.mxu0 %vm29_vm0, %v1937_v9  ;;  %3575 = vmatprep.subr.bf16.mxu1 %v3921_v52 }
  0x33   :  { %3314 = vmatmul.mubr.msk.f32.vlgmr.msra.gmra.mrb[20].mxu1 %vm29_vm0, %v1938_v10 }
  0x34   :  { %3321 = vmatmul.mubr.msk.f32.vlgmr.msra.gmra.mrb[22].mxu0 %vm29_vm0, %v2029_v11  ;;  %3577 = vmatpush3.bf16.msra.mxu1 %v3921_v52 }
  0x35   :  { %3327 = vmatprep.mubr.msk.f32.mxu1 %vm29_vm0, %v2119_v12  ;;  %3346 = vmatprep.mubr.msk.f32.mxu0 %vm3706_vm1, %v3703_v6 }
  0x37   :  { %3328 = vmatmul.mubr.msk.f32.vlgmr.msra.gmra.mrb[22].mxu1 %vm29_vm0, %v2120_v13 }
  0x38   :  { %3365 = vmatprep.mubr.msk.f32.mxu1 %vm3706_vm1, %v3703_v6 }
  0xdb   :  { %v3168_v16 = vpop.f32.mrb[0].mxu0 }
  0xdc   :  { %v114_v17 = vadd.f32 %v3168_v16, %v112_v14  ;;  %v102_v18 = vpop.f32.mrb[1].mxu0 }
  0xdd   :  { %v113_v19 = vadd.f32 %v111_v15, %v102_v18 }
  0xde   :  { %116 = vst [vmem:[#allocation2 + $0x9] sm:$0x7f] %v114_v17  ;;  %v3175_v20 = vpop.f32.mrb[0].mxu1 }
  0xdf   :  { %115 = vst [vmem:[#allocation2 + $0x1] sm:$0xff] %v113_v19  ;;  %v3182_v21 = vpop.f32.mrb[2].mxu0  ;;  %v193_v22 = vpop.f32.mrb[1].mxu1 }
  0xe0   :  { %v284_v23 = vpop.f32.mrb[3].mxu0 }
  0xe2   :  { %v3189_v24 = vpop.f32.mrb[2].mxu1 }
  0xe3   :  { %v4054_v25 = vpop.f32.mrb[4].mxu0  ;;  %v375_v26 = vpop.f32.mrb[3].mxu1 }
  0xe4   :  { %v4056_v27 = vpop.f32.mrb[5].mxu0 }
  0xe6   :  { %v203_v28 = vld [vmem:[#allocation2 + $0x8] sm:$0xff]  ;;  %v202_v29 = vld [vmem:[#allocation2] sm:$0xff]  ;;  %v4058_v30 = vpop.f32.mrb[4].mxu1 }
  0xe7   :  { %v205_v31 = vadd.f32 %v3175_v20, %v203_v28  ;;  %v204_v32 = vadd.f32 %v202_v29, %v193_v22  ;;  %v4060_v33 = vpop.f32.mrb[6].mxu0  ;;  %v557_v34 = vpop.f32.mrb[5].mxu1 }
  0xe8   :  { %v4062_v35 = vpop.f32.mrb[7].mxu0 }
  0xe9   :  { %207 = vst [vmem:[#allocation2 + $0x8] sm:$0xff] %v205_v31  ;;  %v295_v36 = vadd.f32 %v284_v23, %v204_v32 }
  0xea   :  { %v4064_v37 = vpop.f32.mrb[6].mxu1 }
  0xeb   :  { %297 = vst [vmem:[#allocation2] sm:$0xff] %v295_v36  ;;  %v4066_v38 = vpop.f32.mrb[8].mxu0  ;;  %v4068_v39 = vpop.f32.mrb[7].mxu1 }
  0xec   :  { %v4070_v40 = vpop.f32.mrb[9].mxu0 }
  0xee   :  { %v4072_v41 = vpop.f32.mrb[8].mxu1 }
  0xef   :  { %v4074_v42 = vpop.f32.mrb[10].mxu0  ;;  %v4076_v43 = vpop.f32.mrb[9].mxu1 }
  0xf0   :  { %v294_v44 = vld [vmem:[#allocation2 + $0x8] sm:$0x7f]  ;;  %v4078_v45 = vpop.f32.mrb[11].mxu0 }
  0xf1   :  { %v296_v46 = vadd.f32 %v3182_v21, %v294_v44 }
  0xf2   :  { %v4080_v49 = vpop.f32.mrb[10].mxu1 }
  0xf3   :  { %298 = vst [vmem:[#allocation2 + $0x8] sm:$0x7f] %v296_v46  ;;  %v3252_v50 = vpop.f32.mrb[12].mxu0  ;;  %v4082_v51 = vpop.f32.mrb[11].mxu1 }
  0xf4   :  { %v1206_v52 = vadd.f32 %v3252_v50, %v1204_v47  ;;  %v1194_v53 = vpop.f32.mrb[13].mxu0 }
  0xf5   :  { %v1205_v54 = vadd.f32 %v1203_v48, %v1194_v53 }
  0xf6   :  { %1208 = vst [vmem:[#allocation2 + $0x19] sm:$0x7f] %v1206_v52  ;;  %v3259_v55 = vpop.f32.mrb[12].mxu1 }
  0xf7   :  { %1207 = vst [vmem:[#allocation2 + $0x11] sm:$0xff] %v1205_v54  ;;  %v1285_v56 = vpop.f32.mrb[13].mxu1  ;;  %v3266_v57 = vpop.f32.mrb[14].mxu0 }
  0xf8   :  { %v1376_v58 = vpop.f32.mrb[15].mxu0 }
  0xfa   :  { %v385_v59 = vld [vmem:[#allocation2 + $0x9] sm:$0x7f]  ;;  %v384_v60 = vld [vmem:[#allocation2 + $0x1] sm:$0xff]  ;;  %v3273_v61 = vpop.f32.mrb[14].mxu1 }
  0xfb   :  { %v387_v62 = vadd.f32 %v3189_v24, %v385_v59  ;;  %v386_v63 = vadd.f32 %v384_v60, %v375_v26  ;;  %v1467_v0 = vpop.f32.mrb[15].mxu1  ;;  %v3280_v1 = vpop.f32.mrb[16].mxu0 }
  0xfc   :  { %v1558_v2 = vpop.f32.mrb[17].mxu0 }
  0xfd   :  { %389 = vst [vmem:[#allocation2 + $0x9] sm:$0x7f] %v387_v62  ;;  %388 = vst [vmem:[#allocation2 + $0x1] sm:$0xff] %v386_v63 }
  0xfe   :  { %v1295_v3 = vld [vmem:[#allocation2 + $0x18] sm:$0xff]  ;;  %v1294_v4 = vld [vmem:[#allocation2 + $0x10] sm:$0xff]  ;;  %v3287_v5 = vpop.f32.mrb[16].mxu1 }
  0xff   :  { %v1297_v7 = vadd.f32 %v3259_v55, %v1295_v3  ;;  %v1296_v8 = vadd.f32 %v1294_v4, %v1285_v56  ;;  %v1649_v9 = vpop.f32.mrb[17].mxu1  ;;  %v3294_v10 = vpop.f32.mrb[18].mxu0 }
 0x100   :  { %v1740_v11 = vpop.f32.mrb[19].mxu0 }
 0x101   :  { %1299 = vst [vmem:[#allocation2 + $0x18] sm:$0xff] %v1297_v7  ;;  %v1387_v12 = vadd.f32 %v1376_v58, %v1296_v8 }
 0x102   :  { %v4084_v13 = vpop.f32.mrb[18].mxu1 }
 0x103   :  { %1389 = vst [vmem:[#allocation2 + $0x10] sm:$0xff] %v1387_v12  ;;  %v4086_v14 = vpop.f32.mrb[19].mxu1  ;;  %v4088_v15 = vpop.f32.mrb[20].mxu0 }
 0x104   :  { %v476_v16 = vld [vmem:[#allocation2 + $0x8] sm:$0xff]  ;;  %v475_v17 = vld [vmem:[#allocation2] sm:$0xff]  ;;  %v4090_v18 = vpop.f32.mrb[21].mxu0 }
 0x105   :  { %v478_v19 = vadd.f32 %v4054_v25, %v476_v16  ;;  %v477_v20 = vadd.f32 %v475_v17, %v4056_v27 }
 0x106   :  { %v4094_v21 = vpop.f32.mrb[20].mxu1 }
 0x107   :  { %480 = vst [vmem:[#allocation2 + $0x8] sm:$0xff] %v478_v19  ;;  %v568_v22 = vadd.f32 %v557_v34, %v477_v20  ;;  %v4096_v23 = vpop.f32.mrb[21].mxu1  ;;  %v4098_v24 = vpop.f32.mrb[22].mxu0 }
 0x108   :  { %v1386_v26 = vld [vmem:[#allocation2 + $0x18] sm:$0x7f]  ;;  %v4100_v28 = vpop.f32.mrb[23].mxu0 }
 0x109   :  { %570 = vst [vmem:[#allocation2] sm:$0xff] %v568_v22  ;;  %v1388_v29 = vadd.f32 %v3266_v57, %v1386_v26  ;;  %v2245_v22 = vld [vmem:[%s4402_s3 + $0x8] sm:$0xff] }
 0x10a   :  { %v4102_v31 = vpop.f32.mrb[22].mxu1 }
 0x10b   :  { %1390 = vst [vmem:[#allocation2 + $0x18] sm:$0x7f] %v1388_v29  ;;  %v4104_v32 = vpop.f32.mrb[23].mxu1 }
 0x10e   :  { %v567_v25 = vld [vmem:[#allocation2 + $0x8] sm:$0x7f] }
 0x10f   :  { %v569_v27 = vadd.f32 %v4058_v30, %v567_v25 }
 0x111   :  { %571 = vst [vmem:[#allocation2 + $0x8] sm:$0x7f] %v569_v27 }
 0x112   :  { %v1477_v36 = vld [vmem:[#allocation2 + $0x19] sm:$0x7f]  ;;  %v1476_v34 = vld [vmem:[#allocation2 + $0x11] sm:$0xff] }
 0x113   :  { %v1479_v44 = vadd.f32 %v3273_v61, %v1477_v36  ;;  %v1478_v46 = vadd.f32 %v1476_v34, %v1467_v0 }
 0x115   :  { %1481 = vst [vmem:[#allocation2 + $0x19] sm:$0x7f] %v1479_v44  ;;  %1480 = vst [vmem:[#allocation2 + $0x11] sm:$0xff] %v1478_v46 }
 0x118   :  { %v658_v47 = vld [vmem:[#allocation2 + $0x9] sm:$0x7f]  ;;  %v657_v48 = vld [vmem:[#allocation2 + $0x1] sm:$0xff] }
 0x119   :  { %v660_v50 = vadd.f32 %v4060_v33, %v658_v47  ;;  %v659_v52 = vadd.f32 %v657_v48, %v4062_v35  ;;  %v2256_v47 = vld [vmem:[%s4402_s3 + $0x50] sm:$0xff]  ;;  %v2257_v48 = vld [vmem:[%s4402_s3 + $0x58] sm:$0xff] }
 0x11b   :  { %662 = vst [vmem:[#allocation2 + $0x9] sm:$0x7f] %v660_v50  ;;  %661 = vst [vmem:[#allocation2 + $0x1] sm:$0xff] %v659_v52  ;;  %v2246_v50 = vld [vmem:[%s4402_s3 + $0x10] sm:$0xff] }
 0x11c   :  { %v1568_v53 = vld [vmem:[#allocation2 + $0x18] sm:$0xff]  ;;  %v1567_v54 = vld [vmem:[#allocation2 + $0x10] sm:$0xff] }
 0x11d   :  { %v1570_v55 = vadd.f32 %v3280_v1, %v1568_v53  ;;  %v1569_v56 = vadd.f32 %v1567_v54, %v1558_v2  ;;  %v2258_v54 = vld [vmem:[%s4402_s3 + $0x60] sm:$0xff] }
 0x11f   :  { %1572 = vst [vmem:[#allocation2 + $0x18] sm:$0xff] %v1570_v55  ;;  %v1660_v30 = vadd.f32 %v1649_v9, %v1569_v56  ;;  %v2259_v55 = vld [vmem:[%s4402_s3 + $0x68] sm:$0xff]  ;;  %v2248_v56 = vld [vmem:[%s4402_s3 + $0x20] sm:$0xff] }
 0x121   :  { %1662 = vst [vmem:[#allocation2 + $0x10] sm:$0xff] %v1660_v30  ;;  %v2249_v30 = vld [vmem:[%s4402_s3 + $0x28] sm:$0xff] }
 0x122   :  { %v749_v57 = vld [vmem:[#allocation2 + $0x8] sm:$0xff]  ;;  %v748_v58 = vld [vmem:[#allocation2] sm:$0xff] }
 0x123   :  { %v751_v59 = vadd.f32 %v4064_v37, %v749_v57  ;;  %v750_v60 = vadd.f32 %v748_v58, %v4068_v39  ;;  %v3597_v57 = vpack.c.bf16 %v2249_v30, %v2248_v56  ;;  %v2260_v58 = vld [vmem:[%s4402_s3 + $0x70] sm:$0xff]  ;;  %v2582_v56 = vld [vmem:[%s4402_s3 + $0x120] sm:$0xff] }
 0x124   :  { %v2666_v30 = vld [vmem:[%s4402_s3 + $0x160] sm:$0xff] }
 0x125   :  { %753 = vst [vmem:[#allocation2 + $0x8] sm:$0xff] %v751_v59  ;;  %v841_v33 = vadd.f32 %v4070_v40, %v750_v60  ;;  %v2261_v59 = vld [vmem:[%s4402_s3 + $0x78] sm:$0xff]  ;;  %v2250_v60 = vld [vmem:[%s4402_s3 + $0x30] sm:$0xff] }
 0x126   :  { %v1659_v61 = vld [vmem:[#allocation2 + $0x18] sm:$0x7f] }
 0x127   :  { %843 = vst [vmem:[#allocation2] sm:$0xff] %v841_v33  ;;  %v1661_v35 = vadd.f32 %v3287_v5, %v1659_v61  ;;  %v3588_v33 = vpack.c.bf16 %v2261_v59, %v2260_v58  ;;  %v2251_v61 = vld [vmem:[%s4402_s3 + $0x38] sm:$0xff] }
 0x129   :  { %1663 = vst [vmem:[#allocation2 + $0x18] sm:$0x7f] %v1661_v35  ;;  %v3600_v35 = vpack.c.bf16 %v2251_v61, %v2250_v60  ;;  %v2584_v60 = vld [vmem:[%s4402_s3 + $0x130] sm:$0xff] }
 0x12a   :  { %v2668_v61 = vld [vmem:[%s4402_s3 + $0x170] sm:$0xff] }
 0x12c   :  { %v840_v62 = vld [vmem:[#allocation2 + $0x8] sm:$0x7f] }
 0x12d   :  { %v842_v63 = vadd.f32 %v4066_v38, %v840_v62 }
 0x12f   :  { %844 = vst [vmem:[#allocation2 + $0x8] sm:$0x7f] %v842_v63 }
 0x130   :  { %v1750_v0 = vld [vmem:[#allocation2 + $0x19] sm:$0x7f]  ;;  %v1749_v1 = vld [vmem:[#allocation2 + $0x11] sm:$0xff] }
 0x131   :  { %v1752_v2 = vadd.f32 %v3294_v10, %v1750_v0  ;;  %v1751_v3 = vadd.f32 %v1749_v1, %v1740_v11  ;;  %v2984_v1 = vld [vmem:[%s4401_s2] ss:$0 sm:$0xff] }
 0x133   :  { %1754 = vst [vmem:[#allocation2 + $0x19] sm:$0x7f] %v1752_v2  ;;  %1753 = vst [vmem:[#allocation2 + $0x11] sm:$0xff] %v1751_v3 }
 0x136   :  { %v931_v37 = vld [vmem:[#allocation2 + $0x9] sm:$0x7f]  ;;  %v930_v4 = vld [vmem:[#allocation2 + $0x1] sm:$0xff] }
 0x137   :  { %v933_v39 = vadd.f32 %v4072_v41, %v931_v37  ;;  %v932_v40 = vadd.f32 %v930_v4, %v4076_v43 }
 0x139   :  { %935 = vst [vmem:[#allocation2 + $0x9] sm:$0x7f] %v933_v39  ;;  %934 = vst [vmem:[#allocation2 + $0x1] sm:$0xff] %v932_v40 }
 0x13a   :  { %v1841_v5 = vld [vmem:[#allocation2 + $0x18] sm:$0xff]  ;;  %v1840_v7 = vld [vmem:[#allocation2 + $0x10] sm:$0xff] }
 0x13b   :  { %v1843_v8 = vadd.f32 %v4084_v13, %v1841_v5  ;;  %v1842_v38 = vadd.f32 %v1840_v7, %v4086_v14 }
 0x13d   :  { %1845 = vst [vmem:[#allocation2 + $0x18] sm:$0xff] %v1843_v8  ;;  %v1933_v9 = vadd.f32 %v4090_v18, %v1842_v38  ;;  %v2410_v8 = vld [vmem:[%s4402_s3 + $0x80] sm:$0xff]  ;;  %v2411_v38 = vld [vmem:[%s4402_s3 + $0x88] sm:$0xff] }
 0x13f   :  { %1935 = vst [vmem:[#allocation2 + $0x10] sm:$0xff] %v1933_v9  ;;  %v2494_v9 = vld [vmem:[%s4402_s3 + $0xc0] sm:$0xff] }
 0x140   :  { %v1022_v10 = vld [vmem:[#allocation2 + $0x8] sm:$0xff]  ;;  %v1021_v11 = vld [vmem:[#allocation2] sm:$0xff] }
 0x141   :  { %v1024_v12 = vadd.f32 %v4074_v42, %v1022_v10  ;;  %v1023_v41 = vadd.f32 %v1021_v11, %v4078_v45  ;;  %v2254_v45 = vld [vmem:[%s4402_s3 + $0x40] sm:$0xff]  ;;  %v2495_v10 = vld [vmem:[%s4402_s3 + $0xc8] sm:$0xff]  ;;  %v3603_v11 = vpack.c.bf16 %v2411_v38, %v2410_v8 }
 0x143   :  { %1026 = vst [vmem:[#allocation2 + $0x8] sm:$0xff] %v1024_v12  ;;  %v1114_v43 = vadd.f32 %v4082_v51, %v1023_v41  ;;  %v2255_v51 = vld [vmem:[%s4402_s3 + $0x48] sm:$0xff]  ;;  %v3615_v12 = vpack.c.bf16 %v2495_v10, %v2494_v9  ;;  %v2412_v41 = vld [vmem:[%s4402_s3 + $0x90] sm:$0xff] }
 0x144   :  { %v1932_v16 = vld [vmem:[#allocation2 + $0x18] sm:$0x7f] }
 0x145   :  { %1116 = vst [vmem:[#allocation2] sm:$0xff] %v1114_v43  ;;  %v1934_v17 = vadd.f32 %v4088_v15, %v1932_v16  ;;  %v2244_v15 = vld [vmem:[%s4402_s3] sm:$0xff]  ;;  %v2413_v43 = vld [vmem:[%s4402_s3 + $0x98] sm:$0xff]  ;;  %v2496_v16 = vld [vmem:[%s4402_s3 + $0xd0] sm:$0xff] }
 0x147   :  { %1936 = vst [vmem:[#allocation2 + $0x18] sm:$0x7f] %v1934_v17  ;;  %v2497_v17 = vld [vmem:[%s4402_s3 + $0xd8] sm:$0xff] }
 0x14a   :  { %v1113_v13 = vld [vmem:[#allocation2 + $0x8] sm:$0x7f] }
 0x14b   :  { %v1115_v14 = vadd.f32 %v4080_v49, %v1113_v13  ;;  %v3704_v49 = vmov 0.0|0.0  }
 0x14c   :  { %3578 = vmatprep.subr.bf16.mxu0 %v3704_v49  ;;  %3590 = vmatprep.subr.bf16.mxu1 %v3704_v49 }
 0x14d   :  { %1117 = vst [vmem:[#allocation2 + $0x8] sm:$0x7f] %v1115_v14 }
 0x14e   :  { %v2023_v18 = vld [vmem:[#allocation2 + $0x19] sm:$0x7f]  ;;  %v2022_v19 = vld [vmem:[#allocation2 + $0x11] sm:$0xff] }
 0x14f   :  { %v2025_v20 = vadd.f32 %v4094_v21, %v2023_v18  ;;  %v2024_v42 = vadd.f32 %v2022_v19, %v4096_v23  ;;  %v3579_v21 = vpack.c.bf16 %v2255_v51, %v2254_v45  ;;  %v3591_v23 = vpack.c.bf16 %v2245_v22, %v2244_v15  ;;  %v2498_v45 = vld [vmem:[%s4402_s3 + $0xe0] sm:$0xff]  ;;  %v2499_v51 = vld [vmem:[%s4402_s3 + $0xe8] sm:$0xff]  ;;  %v2416_v22 = vld [vmem:[%s4402_s3 + $0xb0] sm:$0xff] }
 0x150   :  { %v3606_v18 = vpack.c.bf16 %v2413_v43, %v2412_v41  ;;  %v3618_v19 = vpack.c.bf16 %v2497_v17, %v2496_v16  ;;  %v2834_v41 = vld [vmem:[%s4402_s3 + $0x1e0] sm:$0xff]  ;;  %v2835_v43 = vld [vmem:[%s4402_s3 + $0x1e8] sm:$0xff] }
 0x151   :  { %2027 = vst [vmem:[#allocation2 + $0x19] sm:$0x7f] %v2025_v20  ;;  %2026 = vst [vmem:[#allocation2 + $0x11] sm:$0xff] %v2024_v42  ;;  %3580 = vmatpush3.bf16.msra.mxu0 %v3579_v21  ;;  %3592 = vmatpush3.bf16.msra.mxu1 %v3591_v23  ;;  %v2414_v20 = vld [vmem:[%s4402_s3 + $0xa0] sm:$0xff]  ;;  %v2415_v42 = vld [vmem:[%s4402_s3 + $0xa8] sm:$0xff]  ;;  %v3621_v21 = vpack.c.bf16 %v2499_v51, %v2498_v45  ;;  %v3669_v17 = vpack.c.bf16 %v2835_v43, %v2834_v41 }
 0x152   :  { %3581 = vmatprep.subr.bf16.mxu0 %v3704_v49  ;;  %3593 = vmatprep.subr.bf16.mxu1 %v3704_v49  ;;  %v3609_v15 = vpack.c.bf16 %v2415_v42, %v2414_v20  ;;  %v2417_v23 = vld [vmem:[%s4402_s3 + $0xb8] sm:$0xff] }
 0x154   :  { %v2210_v26 = vld [vmem:[#allocation2] ss:$2 sm:$0xff]  ;;  %v2214_v29 = vld [vmem:[#allocation2 + $0x1] ss:$2 sm:$0xff] }
 0x155   :  { %v2217_v25 = vmax.f32 %v2210_v26, %v2214_v29  ;;  %v2500_v26 = vld [vmem:[%s4402_s3 + $0xf0] sm:$0xff]  ;;  %v2501_v29 = vld [vmem:[%s4402_s3 + $0xf8] sm:$0xff] }
 0x157   :  { %2221 = vrot.lane.b32.xlu0 %v2217_v25, %s3705_s25 }
 0x158   :  { %v2114_v27 = vld [vmem:[#allocation2 + $0x18] sm:$0xff]  ;;  %v2113_v36 = vld [vmem:[#allocation2 + $0x10] sm:$0xff] }
 0x159   :  { %v2116_v34 = vadd.f32 %v4098_v24, %v2114_v27  ;;  %v2115_v44 = vadd.f32 %v2113_v36, %v4100_v28  ;;  %v3582_v24 = vpack.c.bf16 %v2257_v48, %v2256_v47  ;;  %v2247_v28 = vld [vmem:[%s4402_s3 + $0x18] sm:$0xff]  ;;  %v3624_v27 = vpack.c.bf16 %v2501_v29, %v2500_v26  ;;  %v2578_v36 = vld [vmem:[%s4402_s3 + $0x100] sm:$0xff] }
 0x15a   :  { %v3594_v53 = vpack.c.bf16 %v2247_v28, %v2246_v50  ;;  %v2580_v50 = vld [vmem:[%s4402_s3 + $0x110] sm:$0xff]  ;;  %v2665_v28 = vld [vmem:[%s4402_s3 + $0x158] sm:$0xff] }
 0x15b   :  { %2118 = vst [vmem:[#allocation2 + $0x18] sm:$0xff] %v2116_v34  ;;  %v2206_v46 = vadd.f32 %v4104_v32, %v2115_v44  ;;  %3583 = vmatpush3.bf16.msra.mxu0 %v3582_v24  ;;  %v2579_v34 = vld [vmem:[%s4402_s3 + $0x108] sm:$0xff]  ;;  %v2662_v44 = vld [vmem:[%s4402_s3 + $0x140] sm:$0xff]  ;;  %v2664_v24 = vld [vmem:[%s4402_s3 + $0x150] sm:$0xff] }
 0x15c   :  { %3595 = vmatpush3.bf16.msra.mxu1 %v3594_v53  ;;  %3584 = vmatprep.subr.bf16.mxu0 %v3704_v49  ;;  %v3627_v47 = vpack.c.bf16 %v2579_v34, %v2578_v36 }
 0x15d   :  { %2208 = vst [vmem:[#allocation2 + $0x10] sm:$0xff] %v2206_v46  ;;  %3596 = vmatprep.subr.bf16.mxu1 %v3704_v49  ;;  %v2663_v46 = vld [vmem:[%s4402_s3 + $0x148] sm:$0xff] }
 0x15e   :  { %v3639_v48 = vpack.c.bf16 %v2663_v46, %v2662_v44 }
 0x160   :  { %3598 = vmatpush3.bf16.msra.mxu1 %v3597_v57  ;;  %v2667_v57 = vld [vmem:[%s4402_s3 + $0x168] sm:$0xff] }
 0x161   :  { %3599 = vmatprep.subr.bf16.mxu1 %v3704_v49  ;;  %v3645_v59 = vpack.c.bf16 %v2667_v57, %v2666_v30 }
 0x162   :  { %v2205_v52 = vld [vmem:[#allocation2 + $0x18] sm:$0x7f] }
 0x163   :  { %v2207_v32 = vadd.f32 %v4102_v31, %v2205_v52  ;;  %v3585_v31 = vpack.c.bf16 %v2259_v55, %v2258_v54  ;;  %v2581_v52 = vld [vmem:[%s4402_s3 + $0x118] sm:$0xff]  ;;  %v3642_v55 = vpack.c.bf16 %v2665_v28, %v2664_v24 }
 0x164   :  { %3601 = vmatpush3.bf16.msra.mxu1 %v3600_v35  ;;  %v3630_v54 = vpack.c.bf16 %v2581_v52, %v2580_v50  ;;  %v2669_v35 = vld [vmem:[%s4402_s3 + $0x178] sm:$0xff] }
 0x165   :  { %2209 = vst [vmem:[#allocation2 + $0x18] sm:$0x7f] %v2207_v32  ;;  %3586 = vmatpush3.bf16.msra.mxu0 %v3585_v31  ;;  %3614 = vmatprep.subr.bf16.mxu1 %v3704_v49  ;;  %v2583_v31 = vld [vmem:[%s4402_s3 + $0x128] sm:$0xff] }
 0x166   :  { %3587 = vmatprep.subr.bf16.mxu0 %v3704_v49  ;;  %v3633_v58 = vpack.c.bf16 %v2583_v31, %v2582_v56 }
 0x169   :  { %3589 = vmatpush3.bf16.msra.mxu0 %v3588_v33  ;;  %v2585_v33 = vld [vmem:[%s4402_s3 + $0x138] sm:$0xff] }
 0x16a   :  { %3602 = vmatprep.subr.bf16.mxu0 %v3704_v49 }
 0x16c   :  { %v2212_v62 = vld [vmem:[#allocation2 + $0x10] ss:$2 sm:$0xff]  ;;  %v2216_v63 = vld [vmem:[#allocation2 + $0x11] ss:$2 sm:$0xff] }
 0x16d   :  { %v2218_v0 = vmax.f32 %v2212_v62, %v2216_v63  ;;  %v3636_v62 = vpack.c.bf16 %v2585_v33, %v2584_v60  ;;  %v3648_v63 = vpack.c.bf16 %v2669_v35, %v2668_v61 }
 0x16f   :  { %2223 = vrot.lane.b32.xlu0 %v2218_v0, %s3705_s25 }
 0x1c9   :  { %v2222_v2 = vpop.permute.xlu0 %2221 }
 0x1ca   :  { %v2227_v3 = vmax.f32 %v2217_v25, %v2222_v2  ;;  %v3612_v25 = vpack.c.bf16 %v2417_v23, %v2416_v22  ;;  %v2830_v2 = vld [vmem:[%s4402_s3 + $0x1c0] sm:$0xff] }
 0x1cc   :  { %v2236_v37 = vadd.f32 %v2984_v1, %v2227_v3  ;;  %v2831_v3 = vld [vmem:[%s4402_s3 + $0x1c8] sm:$0xff] }
 0x1ce   :  { %v2238_v4 = vmax.f32 %v2236_v37, 0.0 }
 0x1d0   :  { %2241 = vst.msk [vmem:[#allocation3] sm:$0xff] %vm2240_vm2, %v2238_v4  ;;  %v3663_v4 = vpack.c.bf16 %v2831_v3, %v2830_v2 }
 0x1e1   :  { %v2224_v39 = vpop.permute.xlu0 %2223 }
 0x1e2   :  { %v2228_v40 = vmax.f32 %v2218_v0, %v2224_v39  ;;  %v2746_v0 = vld [vmem:[%s4402_s3 + $0x180] sm:$0xff]  ;;  %v2748_v39 = vld [vmem:[%s4402_s3 + $0x190] sm:$0xff] }
 0x1e4   :  { %v2237_v5 = vadd.f32 %v2984_v1, %v2228_v40  ;;  %v2747_v1 = vld [vmem:[%s4402_s3 + $0x188] sm:$0xff]  ;;  %v2749_v40 = vld [vmem:[%s4402_s3 + $0x198] sm:$0xff] }
 0x1e5   :  { %v3651_v37 = vpack.c.bf16 %v2747_v1, %v2746_v0  ;;  %v3654_v9 = vpack.c.bf16 %v2749_v40, %v2748_v39 }
 0x1e6   :  { %v2239_v7 = vmax.f32 %v2237_v5, 0.0  ;;  %v2832_v5 = vld [vmem:[%s4402_s3 + $0x1d0] sm:$0xff] }
 0x1e8   :  { %2242 = vst.msk [vmem:[#allocation3 + $0x8] sm:$0xff] %vm2240_vm2, %v2239_v7  ;;  %v2833_v7 = vld [vmem:[%s4402_s3 + $0x1d8] sm:$0xff] }
 0x1e9   :  { %v3666_v10 = vpack.c.bf16 %v2833_v7, %v2832_v5 }
 0x1ef   :  { %v2253_v13 = vld [vmem:[#allocation3 + $0x1] ss:$8 sm:$0x3]  ;;  %v2243_v14 = vld [vmem:[#allocation3] ss:$8 sm:$0x3] }
 0x1f0   :  { %3347 = vmatmul.mubr.msk.f32.vlgmr.msra.gmra.mrb[24].mxu0 %vm2240_vm2, %v2253_v13  ;;  %3366 = vmatmul.mubr.msk.f32.vlgmr.msra.gmra.mrb[24].mxu1 %vm2240_vm2, %v2243_v14  ;;  %v2409_v32 = vld [vmem:[#allocation3 + $0x2] ss:$8 sm:$0x3]  ;;  %v2493_v53 = vld [vmem:[#allocation3 + $0x3] ss:$8 sm:$0x3] }
 0x1f1   :  { %3604 = vmatpush3.bf16.msra.mxu0 %v3603_v11  ;;  %3616 = vmatpush3.bf16.msra.mxu1 %v3615_v12  ;;  %v2577_v8 = vld [vmem:[#allocation3 + $0x4] ss:$8 sm:$0x3]  ;;  %v2661_v38 = vld [vmem:[#allocation3 + $0x5] ss:$8 sm:$0x3] }
 0x1f2   :  { %3605 = vmatprep.subr.bf16.mxu0 %v3704_v49  ;;  %3617 = vmatprep.subr.bf16.mxu1 %v3704_v49  ;;  %v2750_v11 = vld [vmem:[%s4402_s3 + $0x1a0] sm:$0xff]  ;;  %v2751_v12 = vld [vmem:[%s4402_s3 + $0x1a8] sm:$0xff]  ;;  %v2752_v13 = vld [vmem:[%s4402_s3 + $0x1b0] sm:$0xff] }
 0x1f3   :  { %3384 = vmatprep.mubr.msk.f32.mxu0 %vm3706_vm1, %v3703_v6  ;;  %3403 = vmatprep.mubr.msk.f32.mxu1 %vm3706_vm1, %v3703_v6  ;;  %v3657_v16 = vpack.c.bf16 %v2751_v12, %v2750_v11  ;;  %v2753_v14 = vld [vmem:[%s4402_s3 + $0x1b8] sm:$0xff]  ;;  %v2745_v42 = vld [vmem:[#allocation3 + $0x6] ss:$8 sm:$0x3] }
 0x1f4   :  { %v2829_v45 = vld [vmem:[#allocation3 + $0x7] ss:$8 sm:$0x3] }
 0x1f5   :  { %3607 = vmatpush3.bf16.msra.mxu0 %v3606_v18  ;;  %3619 = vmatpush3.bf16.msra.mxu1 %v3618_v19  ;;  %v2837_v18 = vld [vmem:[%s4402_s3 + $0x1f8] sm:$0xff]  ;;  %v3660_v19 = vpack.c.bf16 %v2753_v14, %v2752_v13 }
 0x1f6   :  { %3608 = vmatprep.subr.bf16.mxu0 %v3704_v49  ;;  %3620 = vmatprep.subr.bf16.mxu1 %v3704_v49 }
 0x1f9   :  { %3610 = vmatpush3.bf16.msra.mxu0 %v3609_v15  ;;  %3622 = vmatpush3.bf16.msra.mxu1 %v3621_v21 }
 0x1fa   :  { %3611 = vmatprep.subr.bf16.mxu0 %v3704_v49  ;;  %3623 = vmatprep.subr.bf16.mxu1 %v3704_v49 }
 0x1fd   :  { %3613 = vmatpush3.bf16.msra.mxu0 %v3612_v25  ;;  %3625 = vmatpush3.bf16.msra.mxu1 %v3624_v27 }
 0x1fe   :  { %3626 = vmatprep.subr.bf16.mxu0 %v3704_v49  ;;  %3638 = vmatprep.subr.bf16.mxu1 %v3704_v49 }
 0x200   :  { %3385 = vmatmul.mubr.msk.f32.vlgmr.msra.gmra.mrb[26].mxu0 %vm2240_vm2, %v2409_v32  ;;  %3404 = vmatmul.mubr.msk.f32.vlgmr.msra.gmra.mrb[26].mxu1 %vm2240_vm2, %v2493_v53 }
 0x201   :  { %3628 = vmatpush3.bf16.msra.mxu0 %v3627_v47  ;;  %3640 = vmatpush3.bf16.msra.mxu1 %v3639_v48 }
 0x202   :  { %3629 = vmatprep.subr.bf16.mxu0 %v3704_v49  ;;  %3641 = vmatprep.subr.bf16.mxu1 %v3704_v49 }
 0x203   :  { %3422 = vmatprep.mubr.msk.f32.mxu0 %vm3706_vm1, %v3703_v6  ;;  %3441 = vmatprep.mubr.msk.f32.mxu1 %vm3706_vm1, %v3703_v6 }
 0x205   :  { %3631 = vmatpush3.bf16.msra.mxu0 %v3630_v54  ;;  %3643 = vmatpush3.bf16.msra.mxu1 %v3642_v55  ;;  %v2993_v54 = vld [vmem:[%s4403_s4] ss:$0 sm:$0xff] }
 0x206   :  { %3632 = vmatprep.subr.bf16.mxu0 %v3704_v49  ;;  %3644 = vmatprep.subr.bf16.mxu1 %v3704_v49 }
 0x209   :  { %3634 = vmatpush3.bf16.msra.mxu0 %v3633_v58  ;;  %3646 = vmatpush3.bf16.msra.mxu1 %v3645_v59 }
 0x20a   :  { %3635 = vmatprep.subr.bf16.mxu0 %v3704_v49  ;;  %3647 = vmatprep.subr.bf16.mxu1 %v3704_v49 }
 0x20d   :  { %3637 = vmatpush3.bf16.msra.mxu0 %v3636_v62  ;;  %3649 = vmatpush3.bf16.msra.mxu1 %v3648_v63 }
 0x20e   :  { %3650 = vmatprep.subr.bf16.mxu0 %v3704_v49  ;;  %3662 = vmatprep.subr.bf16.mxu1 %v3704_v49 }
 0x210   :  { %3423 = vmatmul.mubr.msk.f32.vlgmr.msra.gmra.mrb[28].mxu0 %vm2240_vm2, %v2577_v8  ;;  %3442 = vmatmul.mubr.msk.f32.vlgmr.msra.gmra.mrb[28].mxu1 %vm2240_vm2, %v2661_v38 }
 0x211   :  { %3652 = vmatpush3.bf16.msra.mxu0 %v3651_v37  ;;  %3664 = vmatpush3.bf16.msra.mxu1 %v3663_v4 }
 0x212   :  { %3653 = vmatprep.subr.bf16.mxu0 %v3704_v49  ;;  %3665 = vmatprep.subr.bf16.mxu1 %v3704_v49 }
 0x213   :  { %3460 = vmatprep.mubr.msk.f32.mxu0 %vm3706_vm1, %v3703_v6  ;;  %3479 = vmatprep.mubr.msk.f32.mxu1 %vm3706_vm1, %v3703_v6  ;;  %v2836_v6 = vld [vmem:[%s4402_s3 + $0x1f0] sm:$0xff] }
 0x214   :  { %v3672_v20 = vpack.c.bf16 %v2837_v18, %v2836_v6 }
 0x215   :  { %3655 = vmatpush3.bf16.msra.mxu0 %v3654_v9  ;;  %3667 = vmatpush3.bf16.msra.mxu1 %v3666_v10 }
 0x216   :  { %3656 = vmatprep.subr.bf16.mxu0 %v3704_v49  ;;  %3668 = vmatprep.subr.bf16.mxu1 %v3704_v49 }
 0x219   :  { %3658 = vmatpush3.bf16.msra.mxu0 %v3657_v16  ;;  %3670 = vmatpush3.bf16.msra.mxu1 %v3669_v17 }
 0x21a   :  { %3659 = vmatprep.subr.bf16.mxu0 %v3704_v49  ;;  %3671 = vmatprep.subr.bf16.mxu1 %v3704_v49 }
 0x21d   :  { %3661 = vmatpush3.bf16.msra.mxu0 %v3660_v19  ;;  %3673 = vmatpush3.bf16.msra.mxu1 %v3672_v20 }
 0x220   :  { %3461 = vmatmul.mubr.msk.f32.vlgmr.msra.gmra.mrb[30].mxu0 %vm2240_vm2, %v2745_v42  ;;  %3480 = vmatmul.mubr.msk.f32.vlgmr.msra.gmra.mrb[30].mxu1 %vm2240_vm2, %v2829_v45 }
 0x2c3   :  { %v2331_v51 = vpop.f32.mrb[24].mxu0  ;;  %v2404_v15 = vpop.f32.mrb[24].mxu1 }
 0x2c4   :  { %v2405_v21 = vadd.f32 %v2404_v15, %v2331_v51  ;;  %v3348_v22 = vpop.f32.mrb[25].mxu0  ;;  %v3367_v23 = vpop.f32.mrb[25].mxu1 }
 0x2d3   :  { %v2487_v26 = vpop.f32.mrb[26].mxu0  ;;  %v2571_v29 = vpop.f32.mrb[26].mxu1 }
 0x2d4   :  { %v2491_v25 = vadd.f32 %v2487_v26, %v2405_v21  ;;  %v3386_v27 = vpop.f32.mrb[27].mxu0  ;;  %v3405_v36 = vpop.f32.mrb[27].mxu1 }
 0x2d6   :  { %v2575_v34 = vadd.f32 %v2571_v29, %v2491_v25 }
 0x2e3   :  { %v2655_v49 = vpop.f32.mrb[28].mxu0  ;;  %v2739_v44 = vpop.f32.mrb[28].mxu1 }
 0x2e4   :  { %v2659_v46 = vadd.f32 %v2655_v49, %v2575_v34  ;;  %v3424_v47 = vpop.f32.mrb[29].mxu0  ;;  %v3443_v48 = vpop.f32.mrb[29].mxu1 }
 0x2e6   :  { %v2743_v50 = vadd.f32 %v2739_v44, %v2659_v46 }
 0x2f3   :  { %v2823_v52 = vpop.f32.mrb[30].mxu0  ;;  %v2907_v24 = vpop.f32.mrb[30].mxu1 }
 0x2f4   :  { %v2827_v28 = vadd.f32 %v2823_v52, %v2743_v50  ;;  %v3462_v32 = vpop.f32.mrb[31].mxu0  ;;  %v3481_v53 = vpop.f32.mrb[31].mxu1 }
 0x2f6   :  { %v2911_v55 = vadd.f32 %v2907_v24, %v2827_v28 }
 0x2f8   :  { %v2919_v56 = vadd.f32 %v2993_v54, %v2911_v55 }
 0x2fa   :  { %2921 = vst.msk [vmem:[#allocation4] sm:$0x3] %vm2920_vm3, %v2919_v56 }
 0x2fb   :  { %3690 = shalt.err (!%p3687_p4)
}
 0x2fc   :  { %s3691_s17 = scalar_lea.hbm %s4404_s5, 32 }
 0x2fd   :  { %p3692_p5 = scmp.ne.s32.totalorder %s4404_s5, %s3691_s17  ;;  %p3695_p6 = scmp.lt.u32.totalorder %s3691_s17, %s4404_s5 }
 0x2ff   :  { %p3697_p7 = pnand %p3695_p6, %p3692_p5 }
 0x301   :  { %3700 = shalt.err (!%p3697_p7)
}
 0x302   :  { %2931 = dma.vmem_to_hbm [thread:$0]  %s2929_s13, 32, %s4404_s5, [#allocation5]  }
 0x303   :  { %3701 = dma.done.wait [#allocation5], 32  }
 0x304   :  { %3702 = vsyncadd [#allocation5], 4294967264 }
 0x305   :  { %2935 = vsyncpa [#allocation5], 1 }

</bundles_post_ra>
